<compile_context>
chip_gen: v7x
topology: tpu7x:2x2x1
jax: 0.10.0
libtpu: 0.0.40
codegen_flags: <defaults>
</compile_context>

<pallas_src>
import functools

import jax
import jax.numpy as jnp
from jax.experimental import pallas as pl
from jax.experimental.pallas import tpu as pltpu


def _round_up(x, m):
    return ((x + m - 1) // m) * m


# --------------------------------------------------------------------------
# Kernel: one batch tile of the fused actor + critic forward pass.
# --------------------------------------------------------------------------
def actor_critic_kernel(obs_ref, w1_ref, w2a_ref, w2c_ref, w3a_ref, w3c_ref,
                        b_ref, out_ref, *, action_dim):
    H = w2a_ref.shape[0]          # mlp_hidden_dim
    A = action_dim
    OUT = out_ref.shape[1]        # lane-dense output width (multiple of 128)

    # obs arrives f32; matmul operands are bf16, accumulation is f32 on the MXU.
    x = obs_ref[...].astype(jnp.bfloat16)

    # ---- fused layer 1: [actor_w1 | critic_w1] share the same x -> one matmul
    y1 = jnp.dot(x, w1_ref[...], preferred_element_type=jnp.float32)
    y1 = jnp.maximum(y1 + b_ref[0:1, :2 * H], 0.0)
    h_a = y1[:, :H].astype(jnp.bfloat16)       # lane-aligned slices (H % 128 == 0)
    h_c = y1[:, H:].astype(jnp.bfloat16)

    # ---- layer 2: two separate (TB,H)x(H,H) matmuls (block-diag fusion rejected)
    h_a = jnp.maximum(
        jnp.dot(h_a, w2a_ref[...], preferred_element_type=jnp.float32)
        + b_ref[1:2, :H], 0.0).astype(jnp.bfloat16)
    h_c = jnp.maximum(
        jnp.dot(h_c, w2c_ref[...], preferred_element_type=jnp.float32)
        + b_ref[1:2, H:2 * H], 0.0).astype(jnp.bfloat16)

    # ---- fused heads: actor head -> lanes [0:2A], critic head -> lane [2A].
    # Head weights are zero-padded to OUT lanes, so the two matmuls accumulate
    # into ONE lane-dense f32 result (no concatenate, no narrow N=1 store).
    head = (jnp.dot(h_a, w3a_ref[...], preferred_element_type=jnp.float32)
            + jnp.dot(h_c, w3c_ref[...], preferred_element_type=jnp.float32)
            + b_ref[2:3, :OUT])

    # clamp+exp only on the log_std lanes [A, 2A); mean / value / pad lanes pass
    # through. exp is an EUP op; clip bounds keep it finite in discarded lanes.
    lane = jax.lax.broadcasted_iota(jnp.int32, head.shape, 1)
    is_log_std = (lane >= A) & (lane < 2 * A)
    std_lanes = jnp.exp(jnp.clip(head, -20.0, 2.0))   # torch.clamp(log_std,-20,2).exp()
    out_ref[...] = jnp.where(is_log_std, std_lanes, head)


# --------------------------------------------------------------------------
# Wrapper
# --------------------------------------------------------------------------
def actor_critic_forward(obs, packed, *, action_dim, block_b=512):
    """Returns (mean, std, value) - Normal(mean, std) params + critic value."""
    w1p, w2a, w2c, w3a, w3c, biases = (
        packed["w1p"], packed["w2a"], packed["w2c"],
        packed["w3a"], packed["w3c"], packed["biases"])

    B, in_dim = obs.shape
    H = w2a.shape[0]
    OUT = w3a.shape[1]                         # lane-dense output width
    A = action_dim

    # Batch tile: big enough to amortize per-step overhead, but keep >= 2 grid
    # tiles so both v7x TensorCores get work on the "parallel" batch axis.
    TB = max(8, min(block_b, _round_up(pl.cdiv(B, 2), 8)))
    num_tiles = pl.cdiv(B, TB)                 # partial final block handled by Pallas

    out = pl.pallas_call(
        functools.partial(actor_critic_kernel, action_dim=A),
        out_shape=jax.ShapeDtypeStruct((B, OUT), jnp.float32),
        grid_spec=pltpu.PrefetchScalarGridSpec(
            num_scalar_prefetch=0,
            grid=(num_tiles,),
            in_specs=[
                # obs: streamed per batch tile (the only B-scaling HBM traffic)
                pl.BlockSpec((TB, in_dim), lambda i: (i, 0)),
                # weights / biases: constant block index -> stay VMEM-resident
                pl.BlockSpec((in_dim, 2 * H), lambda i: (0, 0)),
                pl.BlockSpec((H, H), lambda i: (0, 0)),
                pl.BlockSpec((H, H), lambda i: (0, 0)),
                pl.BlockSpec((H, OUT), lambda i: (0, 0)),
                pl.BlockSpec((H, OUT), lambda i: (0, 0)),
                pl.BlockSpec(biases.shape, lambda i: (0, 0)),
            ],
            out_specs=pl.BlockSpec((TB, OUT), lambda i: (i, 0)),
        ),
        compiler_params=pltpu.CompilerParams(
            dimension_semantics=("parallel",)),   # megacore: batch tiles over TCs
    )(obs, w1p, w2a, w2c, w3a, w3c, biases)

    mean = out[:, :A]
    std = out[:, A:2 * A]
    value = out[:, 2 * A:2 * A + 1]
    return mean, std, value


# --------------------------------------------------------------------------
# Parameter init (PyTorch nn.Linear default: U[-1/sqrt(fan_in), 1/sqrt(fan_in)])
# and packing into the consolidated bf16 kernel layout.
# --------------------------------------------------------------------------
def init_params(key, in_dim, hidden, action_dim):
    def linear(k, fan_in, fan_out):
        kw, kb = jax.random.split(k)
        bound = float(fan_in) ** -0.5
        w = jax.random.uniform(kw, (fan_in, fan_out), jnp.float32, -bound, bound)
        b = jax.random.uniform(kb, (fan_out,), jnp.float32, -bound, bound)
        return w, b

    keys = jax.random.split(key, 6)
    aw1, ab1 = linear(keys[0], in_dim, hidden)
    aw2, ab2 = linear(keys[1], hidden, hidden)
    aw3, ab3 = linear(keys[2], hidden, action_dim * 2)   # [mean | log_std] columns
    cw1, cb1 = linear(keys[3], in_dim, hidden)
    cw2, cb2 = linear(keys[4], hidden, hidden)
    cw3, cb3 = linear(keys[5], hidden, 1)
    return dict(aw1=aw1, ab1=ab1, aw2=aw2, ab2=ab2, aw3=aw3, ab3=ab3,
                cw1=cw1, cb1=cb1, cw2=cw2, cb2=cb2, cw3=cw3, cb3=cb3)


def pack_params(p):
    """Consolidate + bf16-cast parameters into the kernel layout."""
    H = p["aw2"].shape[0]
    A2 = p["aw3"].shape[1]
    OUT = max(128, _round_up(A2 + 1, 128))     # lane-dense output width

    bf = jnp.bfloat16
    w1p = jnp.concatenate([p["aw1"], p["cw1"]], axis=1).astype(bf)   # (in, 2H)
    w2a = p["aw2"].astype(bf)                                        # (H, H)
    w2c = p["cw2"].astype(bf)                                        # (H, H)
    # Heads zero-padded into disjoint lane ranges of OUT-wide slabs so the
    # kernel accumulates both into one lane-dense result.
    w3a = jnp.zeros((H, OUT), bf).at[:, :A2].set(p["aw3"].astype(bf))
    w3c = jnp.zeros((H, OUT), bf).at[:, A2:A2 + 1].set(p["cw3"].astype(bf))

    # Bias slab (f32): row0 = [ab1|cb1], row1 = [ab2|cb2], row2 = [ab3|cb3|0...]
    BW = max(2 * H, OUT)
    biases = jnp.zeros((8, BW), jnp.float32)
    biases = biases.at[0, :2 * H].set(jnp.concatenate([p["ab1"], p["cb1"]]))
    biases = biases.at[1, :H].set(p["ab2"])
    biases = biases.at[1, H:2 * H].set(p["cb2"])
    biases = biases.at[2, :A2].set(p["ab3"])
    biases = biases.at[2, A2].set(p["cb3"][0])
    return dict(w1p=w1p, w2a=w2a, w2c=w2c, w3a=w3a, w3c=w3c, biases=biases)


def reference_forward(obs, p):
    """Pure-JAX f32 reference for correctness checking (unfused)."""
    h = jnp.maximum(obs @ p["aw1"] + p["ab1"], 0.0)
    h = jnp.maximum(h @ p["aw2"] + p["ab2"], 0.0)
    head = h @ p["aw3"] + p["ab3"]
    A = head.shape[-1] // 2
    mean = head[:, :A]
    std = jnp.exp(jnp.clip(head[:, A:], -20.0, 2.0))
    c = jnp.maximum(obs @ p["cw1"] + p["cb1"], 0.0)
    c = jnp.maximum(c @ p["cw2"] + p["cb2"], 0.0)
    v = c @ p["cw3"] + p["cb3"]
    return mean, std, v


if __name__ == "__main__":
    # Small shapes consistent with the module: flat observation of size IN_DIM,
    # actor emits ACTION_DIM*2 (mean, log_std), critic emits a scalar value.
    # B is intentionally not a multiple of the batch tile to exercise the
    # partial-final-block path (no host-side padding).
    B, IN_DIM, HIDDEN, ACTION_DIM = 200, 32, 256, 2

    key = jax.random.PRNGKey(0)
    k_obs, k_params = jax.random.split(key)
    obs = jax.random.normal(k_obs, (B, IN_DIM), jnp.float32)
    params = init_params(k_params, IN_DIM, HIDDEN, ACTION_DIM)
    packed = pack_params(params)

    mean, std, value = actor_critic_forward(obs, packed, action_dim=ACTION_DIM,
                                            block_b=512)
    jax.block_until_ready((mean, std, value))

    # sanity check against a pure-JAX f32 reference (kernel matmuls are bf16,
    # hence the relaxed tolerance)
    r_mean, r_std, r_value = reference_forward(obs, params)
    assert mean.shape == (B, ACTION_DIM) and std.shape == (B, ACTION_DIM)
    assert value.shape == (B, 1)
    assert jnp.allclose(mean, r_mean, atol=2e-2, rtol=2e-2)
    assert jnp.allclose(std, r_std, atol=2e-2, rtol=2e-2)
    assert jnp.allclose(value, r_value, atol=2e-2, rtol=2e-2)

    # TODO(synk): Normal(mean, std) rsample / tanh / log_prob from get_action is
    # host-side stochastic sampling, not kernel compute; the kernel returns the
    # distribution parameters (mean, std) and the critic value. The unused
    # `graph` argument of forward() is likewise omitted.
    print("KERNEL_OK")
</pallas_src>

<mosaic_0001>
module attributes {stable_mosaic.version = 11 : i64} {
  func.func @actor_critic_kernel(%arg0: i32, %arg1: memref<104x32xf32, #tpu.memory_space<vmem>>, %arg2: memref<32x512xbf16, #tpu.memory_space<vmem>>, %arg3: memref<256x256xbf16, #tpu.memory_space<vmem>>, %arg4: memref<256x256xbf16, #tpu.memory_space<vmem>>, %arg5: memref<256x128xbf16, #tpu.memory_space<vmem>>, %arg6: memref<256x128xbf16, #tpu.memory_space<vmem>>, %arg7: memref<8x512xf32, #tpu.memory_space<vmem>>, %arg8: memref<104x128xf32, #tpu.memory_space<vmem>>) attributes {dimension_semantics = [#tpu.dimension_semantics<parallel>], iteration_bounds = array<i64: 2>, scalar_prefetch = 0 : i64, scratch_operands = 0 : i64, tpu.core_type = #tpu.core_type<tc>, window_params = [{transform_indices = @transform_0, window_bounds = array<i64: 104, 32>}, {pipeline_mode = #tpu.pipeline_mode<synchronous>, transform_indices = @transform_1, window_bounds = array<i64: 32, 512>}, {pipeline_mode = #tpu.pipeline_mode<synchronous>, transform_indices = @transform_2, window_bounds = array<i64: 256, 256>}, {pipeline_mode = #tpu.pipeline_mode<synchronous>, transform_indices = @transform_3, window_bounds = array<i64: 256, 256>}, {pipeline_mode = #tpu.pipeline_mode<synchronous>, transform_indices = @transform_4, window_bounds = array<i64: 256, 128>}, {pipeline_mode = #tpu.pipeline_mode<synchronous>, transform_indices = @transform_5, window_bounds = array<i64: 256, 128>}, {pipeline_mode = #tpu.pipeline_mode<synchronous>, transform_indices = @transform_6, window_bounds = array<i64: 8, 512>}, {transform_indices = @transform_7, window_bounds = array<i64: 104, 128>}]} {
    %c0 = arith.constant 0 : index
    %c0_0 = arith.constant 0 : index
    %0 = vector.load %arg1[%c0, %c0_0] : memref<104x32xf32, #tpu.memory_space<vmem>>, vector<104x32xf32>
    %1 = arith.truncf %0 : vector<104x32xf32> to vector<104x32xbf16>
    %c0_1 = arith.constant 0 : index
    %c0_2 = arith.constant 0 : index
    %2 = vector.load %arg2[%c0_1, %c0_2] : memref<32x512xbf16, #tpu.memory_space<vmem>>, vector<32x512xbf16>
    %cst = arith.constant dense<0.000000e+00> : vector<104x512xf32>
    %3 = tpu.matmul %1, %2, %cst {dimension_numbers = #tpu.dot_dimension_numbers<[1], [0], [0], [1], [0, 0, 1, 1], [], []>} : vector<104x32xbf16>, vector<32x512xbf16>, vector<104x512xf32> -> vector<104x512xf32>
    %c0_3 = arith.constant 0 : index
    %c0_4 = arith.constant 0 : index
    %4 = vector.load %arg7[%c0_3, %c0_4] : memref<8x512xf32, #tpu.memory_space<vmem>>, vector<1x512xf32>
    %5 = vector.broadcast %4 : vector<1x512xf32> to vector<104x512xf32>
    %6 = arith.addf %3, %5 : vector<104x512xf32>
    %cst_5 = arith.constant 0.000000e+00 : f32
    %7 = vector.broadcast %cst_5 : f32 to vector<104x512xf32>
    %8 = arith.maximumf %6, %7 : vector<104x512xf32>
    %9 = vector.extract_strided_slice %8 {offsets = [0, 0], sizes = [104, 256], strides = [1, 1]} : vector<104x512xf32> to vector<104x256xf32>
    %10 = arith.truncf %9 : vector<104x256xf32> to vector<104x256xbf16>
    %11 = vector.extract_strided_slice %8 {offsets = [0, 256], sizes = [104, 256], strides = [1, 1]} : vector<104x512xf32> to vector<104x256xf32>
    %12 = arith.truncf %11 : vector<104x256xf32> to vector<104x256xbf16>
    %c0_6 = arith.constant 0 : index
    %c0_7 = arith.constant 0 : index
    %13 = vector.load %arg3[%c0_6, %c0_7] : memref<256x256xbf16, #tpu.memory_space<vmem>>, vector<256x256xbf16>
    %cst_8 = arith.constant dense<0.000000e+00> : vector<104x256xf32>
    %14 = tpu.matmul %10, %13, %cst_8 {dimension_numbers = #tpu.dot_dimension_numbers<[1], [0], [0], [1], [0, 0, 1, 1], [], []>} : vector<104x256xbf16>, vector<256x256xbf16>, vector<104x256xf32> -> vector<104x256xf32>
    %c1 = arith.constant 1 : index
    %c0_9 = arith.constant 0 : index
    %15 = vector.load %arg7[%c1, %c0_9] : memref<8x512xf32, #tpu.memory_space<vmem>>, vector<1x256xf32>
    %16 = vector.broadcast %15 : vector<1x256xf32> to vector<104x256xf32>
    %17 = arith.addf %14, %16 : vector<104x256xf32>
    %cst_10 = arith.constant 0.000000e+00 : f32
    %18 = vector.broadcast %cst_10 : f32 to vector<104x256xf32>
    %19 = arith.maximumf %17, %18 : vector<104x256xf32>
    %20 = arith.truncf %19 : vector<104x256xf32> to vector<104x256xbf16>
    %c0_11 = arith.constant 0 : index
    %c0_12 = arith.constant 0 : index
    %21 = vector.load %arg4[%c0_11, %c0_12] : memref<256x256xbf16, #tpu.memory_space<vmem>>, vector<256x256xbf16>
    %cst_13 = arith.constant dense<0.000000e+00> : vector<104x256xf32>
    %22 = tpu.matmul %12, %21, %cst_13 {dimension_numbers = #tpu.dot_dimension_numbers<[1], [0], [0], [1], [0, 0, 1, 1], [], []>} : vector<104x256xbf16>, vector<256x256xbf16>, vector<104x256xf32> -> vector<104x256xf32>
    %c1_14 = arith.constant 1 : index
    %c256 = arith.constant 256 : index
    %23 = vector.load %arg7[%c1_14, %c256] : memref<8x512xf32, #tpu.memory_space<vmem>>, vector<1x256xf32>
    %24 = vector.broadcast %23 : vector<1x256xf32> to vector<104x256xf32>
    %25 = arith.addf %22, %24 : vector<104x256xf32>
    %cst_15 = arith.constant 0.000000e+00 : f32
    %26 = vector.broadcast %cst_15 : f32 to vector<104x256xf32>
    %27 = arith.maximumf %25, %26 : vector<104x256xf32>
    %28 = arith.truncf %27 : vector<104x256xf32> to vector<104x256xbf16>
    %c0_16 = arith.constant 0 : index
    %c0_17 = arith.constant 0 : index
    %29 = vector.load %arg5[%c0_16, %c0_17] : memref<256x128xbf16, #tpu.memory_space<vmem>>, vector<256x128xbf16>
    %cst_18 = arith.constant dense<0.000000e+00> : vector<104x128xf32>
    %30 = tpu.matmul %20, %29, %cst_18 {dimension_numbers = #tpu.dot_dimension_numbers<[1], [0], [0], [1], [0, 0, 1, 1], [], []>} : vector<104x256xbf16>, vector<256x128xbf16>, vector<104x128xf32> -> vector<104x128xf32>
    %c0_19 = arith.constant 0 : index
    %c0_20 = arith.constant 0 : index
    %31 = vector.load %arg6[%c0_19, %c0_20] : memref<256x128xbf16, #tpu.memory_space<vmem>>, vector<256x128xbf16>
    %cst_21 = arith.constant dense<0.000000e+00> : vector<104x128xf32>
    %32 = tpu.matmul %28, %31, %cst_21 {dimension_numbers = #tpu.dot_dimension_numbers<[1], [0], [0], [1], [0, 0, 1, 1], [], []>} : vector<104x256xbf16>, vector<256x128xbf16>, vector<104x128xf32> -> vector<104x128xf32>
    %33 = arith.addf %30, %32 : vector<104x128xf32>
    %c2 = arith.constant 2 : index
    %c0_22 = arith.constant 0 : index
    %34 = vector.load %arg7[%c2, %c0_22] : memref<8x512xf32, #tpu.memory_space<vmem>>, vector<1x128xf32>
    %35 = vector.broadcast %34 : vector<1x128xf32> to vector<104x128xf32>
    %36 = arith.addf %33, %35 : vector<104x128xf32>
    %37 = tpu.iota {dimensions = array<i32: 1>} : vector<104x128xi32>
    %c2_i32 = arith.constant 2 : i32
    %38 = vector.broadcast %c2_i32 : i32 to vector<104x128xi32>
    %39 = arith.cmpi sge, %37, %38 : vector<104x128xi32>
    %c4_i32 = arith.constant 4 : i32
    %40 = vector.broadcast %c4_i32 : i32 to vector<104x128xi32>
    %41 = arith.cmpi slt, %37, %40 : vector<104x128xi32>
    %42 = arith.andi %39, %41 : vector<104x128xi1>
    %cst_23 = arith.constant -2.000000e+01 : f32
    %cst_24 = arith.constant 2.000000e+00 : f32
    %43 = vector.broadcast %cst_23 : f32 to vector<104x128xf32>
    %44 = arith.maximumf %43, %36 : vector<104x128xf32>
    %45 = vector.broadcast %cst_24 : f32 to vector<104x128xf32>
    %46 = arith.minimumf %45, %44 : vector<104x128xf32>
    %47 = math.exp %46 : vector<104x128xf32>
    %48 = arith.select %42, %47, %36 : vector<104x128xi1>, vector<104x128xf32>
    %c0_25 = arith.constant 0 : index
    %c0_26 = arith.constant 0 : index
    %49 = vector.load %arg8[%c0_25, %c0_26] : memref<104x128xf32, #tpu.memory_space<vmem>>, vector<104x128xf32>
    tpu.vector_store %arg8[%c0_25, %c0_26], %48 {strides = array<i32>} : memref<104x128xf32, #tpu.memory_space<vmem>>, vector<104x128xf32>,
    return
  }
  func.func @transform_0(%arg0: i32) -> (i32, i32) {
    %c0_i32 = arith.constant 0 : i32
    %c0_i32_0 = arith.constant 0 : i32
    return %arg0, %c0_i32 : i32, i32
  }
  func.func @transform_1(%arg0: i32) -> (i32, i32) {
    %c0_i32 = arith.constant 0 : i32
    %c0_i32_0 = arith.constant 0 : i32
    %c0_i32_1 = arith.constant 0 : i32
    return %c0_i32, %c0_i32_0 : i32, i32
  }
  func.func @transform_2(%arg0: i32) -> (i32, i32) {
    %c0_i32 = arith.constant 0 : i32
    %c0_i32_0 = arith.constant 0 : i32
    %c0_i32_1 = arith.constant 0 : i32
    return %c0_i32, %c0_i32_0 : i32, i32
  }
  func.func @transform_3(%arg0: i32) -> (i32, i32) {
    %c0_i32 = arith.constant 0 : i32
    %c0_i32_0 = arith.constant 0 : i32
    %c0_i32_1 = arith.constant 0 : i32
    return %c0_i32, %c0_i32_0 : i32, i32
  }
  func.func @transform_4(%arg0: i32) -> (i32, i32) {
    %c0_i32 = arith.constant 0 : i32
    %c0_i32_0 = arith.constant 0 : i32
    %c0_i32_1 = arith.constant 0 : i32
    return %c0_i32, %c0_i32_0 : i32, i32
  }
  func.func @transform_5(%arg0: i32) -> (i32, i32) {
    %c0_i32 = arith.constant 0 : i32
    %c0_i32_0 = arith.constant 0 : i32
    %c0_i32_1 = arith.constant 0 : i32
    return %c0_i32, %c0_i32_0 : i32, i32
  }
  func.func @transform_6(%arg0: i32) -> (i32, i32) {
    %c0_i32 = arith.constant 0 : i32
    %c0_i32_0 = arith.constant 0 : i32
    %c0_i32_1 = arith.constant 0 : i32
    return %c0_i32, %c0_i32_0 : i32, i32
  }
  func.func @transform_7(%arg0: i32) -> (i32, i32) {
    %c0_i32 = arith.constant 0 : i32
    %c0_i32_0 = arith.constant 0 : i32
    return %arg0, %c0_i32 : i32, i32
  }
}

</mosaic_0001>

<bundles_post_ra>
// kernel: tpu_custom_call.1
= control target key start
LH: loop header
LB: loop body
LE: loop exit
PB: predicated region body
PF: predicated region fallthrough
CT: control target
= control target key end

     0   :  { %s3534_s0 = inlined_call_operand.vmem [shape: f32[200,32], index: 0, kind: input, shape index: {}]   ;;  %s3535_s1 = inlined_call_operand.hbm [shape: bf16[32,512], index: 1, kind: input, shape index: {}]   ;;  %s3536_s2 = inlined_call_operand.vmem [shape: bf16[256,256], index: 2, kind: input, shape index: {}]   ;;  %s3537_s3 = inlined_call_operand.hbm [shape: bf16[256,256], index: 3, kind: input, shape index: {}]   ;;  %s3538_s4 = inlined_call_operand.hbm [shape: bf16[256,128], index: 4, kind: input, shape index: {}]   ;;  %s3539_s5 = inlined_call_operand.hbm [shape: bf16[256,128], index: 5, kind: input, shape index: {}]   ;;  %s3540_s6 = inlined_call_operand.hbm [shape: f32[8,512], index: 6, kind: input, shape index: {}]   ;;  %s3541_s7 = inlined_call_operand.hbm [shape: f32[200,128], index: 7, kind: output, shape index: {}]  }
   0x1   :  { %3550 = sst [smem:[#allocation20_spill]] %s3537_s3 }
   0x2   :  { %12 = vsyncpa [#allocation3], 0 }
   0x3   :  { %13 = vsyncpa [#allocation6], 0 }
   0x4   :  { %14 = vsyncpa [#allocation9], 0 }
   0x5   :  { %15 = vsyncpa [#allocation4], 0 }
   0x6   :  { %17 = vsyncpa [#allocation4 + $0x1], 0  ;;  %s2916_s24 = smov 0   ;;  %s2918_s25 = smov 0  }
   0x7   :  { %s2920_s26 = smov 0   ;;  %s2922_s27 = smov 0  }
   0x8 LB: > { %3551 = sst [smem:[#allocation16_spill]] %s2855_s26  ;;  %s2937_s28 = sadd.s32 4294967295, %s2859_s27   ;;  %s2859_s27 = sphi %s2922_s27, %s3575_s27   ;;  %s2855_s26 = sphi %s2920_s26, %s3577_s26   ;;  %s2851_s25 = sphi %s2918_s25, %s3579_s25   ;;  %s2847_s24 = sphi %s2916_s24, %s3578_s24  }
   0x9   : > { %s2123_s29 = sadd.s32 4294967294, %s2859_s27   ;;  %s2941_s30 = sadd.s32 1, %s2859_s27  }
   0xa   : > { %3552 = sst [smem:[#allocation17_spill]] %s2941_s30  ;;  %s182_s8 = sadd.s32 1, %s2855_s26 }
   0xb   : > { %s179_s9 = ssub.s32 %s2859_s27, %s2941_s30  ;;  %p192_p0 = scmp.ne.s32.totalorder %s2855_s26, %s2851_s25 }
   0xc   : > { %p180_p1 = scmp.eq.s32.totalorder %s179_s9, 0  ;;  %p193_p2 = scmp.eq.s32.totalorder %s2937_s28, 1 }
   0xd   : > { %p198_p3 = scmp.ne.s32.totalorder %s2851_s25, %s2847_s24  ;;  %p199_p4 = scmp.eq.s32.totalorder %s2123_s29, 1 }
   0xe   : > { %s2952_s10 = scalar_select %p180_p1, %s2855_s26, %s182_s8  }
   0xf   : > { %p2954_p5 = por %p193_p2, %p192_p0  ;;  %p2958_p6 = por %p199_p4, %p198_p3 }
  0x10   : > { %3553 = sst [smem:[#allocation18_spill]] %s2952_s10  ;;  %p2124_p7 = scmp.ge.s32.totalorder %s2859_s27, 1 }
  0x11   : > { %s3554_s11 = scalar_select %p2954_p5, 1, 0 }
  0x12   : > { %s3555_s12 = scalar_select %p2958_p6, 1, 0 }
  0x13   : > { %p206_p8 = scmp.lt.s32.totalorder %s2859_s27, 3  ;;  %p3542_p9 = scmp.eq.s32.totalorder %s2937_s28, 0 }
  0x14   : > { %3556 = sst [smem:[#allocation19_spill]] %s3555_s12  ;;  %s2861_s14 = smov [#allocation5]  }
  0x15   : > { %p2965_p10 = pnand %p2124_p7, %p206_p8  ;;  %s234_s15 = sshll.u32 %s2861_s14, 4  ;;  %s235_s15 = int_to_ptr.vmem [resolvable:$true] %s234_s15 }
  0x16   : > { %s2862_s17 = smov [#allocation8]   ;;  %s3559_s3 = sld [smem:[#allocation20_spill]] }
  0x17   : > { %s3557_s13 = scalar_select %p2965_p10, 1, 0 }
  0x18   : > { %p2402_p11 = pneg %p2965_p10  ;;  %s260_s18 = sshll.u32 %s2862_s17, 4  ;;  %s261_s18 = int_to_ptr.vmem [resolvable:$true] %s260_s18 }
  0x1a   : > { %p2973_p12 = pnand %p3542_p9, %p2402_p11 }
  0x1c   : > { %s2645_s21 = scalar_lea.hbm %s3559_s3, 4096  ;;  %p2985_p0 = pneg %p2973_p12 }
  0x1d   : > { %p2646_p13 = scmp.ne.s32.totalorder %s3559_s3, %s2645_s21  ;;  %p2652_p3 = scmp.lt.u32.totalorder %s2645_s21, %s3559_s3 }
  0x1f   : > { %p2648_p1 = pnand %p2985_p0, %p2646_p13 }
  0x21   : > { %p2649_p2 = pneg %p2648_p1 }
  0x23   : > { %p2654_p4 = pnand %p2652_p3, %p2649_p2 }
  0x25   : > { %2657 = shalt.err (!%p2654_p4)
}
  0x26   : > { %s2658_s14 = scalar_lea.vmem %s235_s15, 4096  ;;  %p2666_p9 = scmp.lt.s32.totalorder %s235_s15, %s235_s15 }
  0x27   : > { %p2659_p7 = scmp.ne.s32.totalorder %s235_s15, %s2658_s14  ;;  %p2667_p6 = scmp.lt.s32.totalorder %s2658_s14, %s2658_s14 }
  0x29   : > { %p2661_p8 = pnand %p2659_p7, %p2985_p0  ;;  %p2668_p5 = por %p2667_p6, %p2666_p9 }
  0x2b   : > { %p2662_p11 = pneg %p2661_p8 }
  0x2d   : > { %p2669_p10 = pnand %p2668_p5, %p2662_p11 }
  0x2f   : > { %2672 = shalt.err (!%p2669_p10)
}
  0x30   : > { %s2863_s17 = smov 128   ;;  %s2864_s19 = smov 8  }
  0x31   : > { %2408 = dma.hbm_to_vmem [thread:$0]  (!%p2973_p12), %s3559_s3, 4096, %s235_s15, [#allocation6], %s2863_s17, %s2863_s17, %s2864_s19  }
  0x32   : > { %s2865_s22 = smov [#allocation2]   ;;  %s2673_s10 = scalar_lea.hbm %s3539_s5, 2048 }
  0x33   : > { %s218_s23 = sshll.u32 %s2865_s22, 4  ;;  %p2674_p5 = scmp.ne.s32.totalorder %s3539_s5, %s2673_s10  ;;  %s219_s23 = int_to_ptr.vmem [resolvable:$true] %s218_s23 }
  0x34   : > { %p2680_p10 = scmp.lt.u32.totalorder %s2673_s10, %s3539_s5 }
  0x35   : > { %p2676_p6 = pnand %p2674_p5, %p2985_p0 }
  0x37   : > { %p2677_p9 = pneg %p2676_p6 }
  0x39   : > { %p2682_p13 = pnand %p2680_p10, %p2677_p9 }
  0x3b   : > { %2685 = shalt.err (!%p2682_p13)
}
  0x3c   : > { %s2686_s15 = scalar_lea.vmem %s261_s18, 2048  ;;  %p2694_p4 = scmp.lt.s32.totalorder %s261_s18, %s261_s18 }
  0x3d   : > { %p2687_p1 = scmp.ne.s32.totalorder %s261_s18, %s2686_s15  ;;  %p2695_p7 = scmp.lt.s32.totalorder %s2686_s15, %s2686_s15 }
  0x3f   : > { %p2689_p2 = pnand %p2687_p1, %p2985_p0  ;;  %p2696_p8 = por %p2695_p7, %p2694_p4 }
  0x41   : > { %p2690_p3 = pneg %p2689_p2 }
  0x43   : > { %p2697_p11 = pnand %p2696_p8, %p2690_p3 }
  0x45   : > { %2700 = shalt.err (!%p2697_p11)
}
  0x46   : > { %s3548_s26 = smov 64   ;;  %s3549_s17 = smov 4  }
  0x47   : > { %2414 = dma.hbm_to_vmem [thread:$0]  (!%p2973_p12), %s3539_s5, 2048, %s261_s18, [#allocation9], %s3548_s26, %s3548_s26, %s3549_s17  }
  0x48   : > { %s2701_s20 = scalar_lea.hbm %s3535_s1, 1024 }
  0x49   : > { %p2702_p5 = scmp.ne.s32.totalorder %s3535_s1, %s2701_s20  ;;  %p2708_p10 = scmp.lt.u32.totalorder %s2701_s20, %s3535_s1 }
  0x4b   : > { %p2704_p6 = pnand %p2702_p5, %p2985_p0 }
  0x4d   : > { %p2705_p9 = pneg %p2704_p6 }
  0x4f   : > { %p2710_p13 = pnand %p2708_p10, %p2705_p9 }
  0x51   : > { %2713 = shalt.err (!%p2710_p13)
}
  0x52   : > { %s2714_s14 = scalar_lea.vmem %s219_s23, 1024  ;;  %p2722_p4 = scmp.lt.s32.totalorder %s219_s23, %s219_s23 }
  0x53   : > { %p2715_p1 = scmp.ne.s32.totalorder %s219_s23, %s2714_s14  ;;  %p2723_p7 = scmp.lt.s32.totalorder %s2714_s14, %s2714_s14 }
  0x55   : > { %p2717_p2 = pnand %p2715_p1, %p2985_p0  ;;  %p2724_p8 = por %p2723_p7, %p2722_p4 }
  0x57   : > { %p2718_p3 = pneg %p2717_p2 }
  0x59   : > { %p2725_p11 = pnand %p2724_p8, %p2718_p3 }
  0x5b   : > { %2728 = shalt.err (!%p2725_p11)
}
  0x5c   : > { %s2868_s18 = smov 256   ;;  %s2869_s15 = smov 16  }
  0x5d   : > { %2405 = dma.hbm_to_vmem [thread:$0]  (!%p2973_p12), %s3535_s1, 1024, %s219_s23, [#allocation3], %s2868_s18, %s2868_s18, %s2869_s15  }
  0x5e   : > { %s2870_s12 = smov [#allocation7]   ;;  %s2871_s20 = smov [#allocation10]  }
  0x5f   : > { %s247_s19 = sshll.u32 %s2870_s12, 4  ;;  %s274_s21 = sshll.u32 %s2871_s20, 4  ;;  %s248_s19 = int_to_ptr.vmem [resolvable:$true] %s247_s19  ;;  %s275_s21 = int_to_ptr.vmem [resolvable:$true] %s274_s21 }
  0x60   : > { %s2729_s9 = scalar_lea.hbm %s3538_s4, 2048 }
  0x61   : > { %p2730_p5 = scmp.ne.s32.totalorder %s3538_s4, %s2729_s9  ;;  %p2736_p10 = scmp.lt.u32.totalorder %s2729_s9, %s3538_s4 }
  0x63   : > { %p2732_p6 = pnand %p2730_p5, %p2985_p0 }
  0x65   : > { %p2733_p9 = pneg %p2732_p6 }
  0x67   : > { %p2738_p13 = pnand %p2736_p10, %p2733_p9 }
  0x69   : > { %2741 = shalt.err (!%p2738_p13)
}
  0x6a   : > { %s2742_s23 = scalar_lea.vmem %s248_s19, 2048  ;;  %p2750_p4 = scmp.lt.s32.totalorder %s248_s19, %s248_s19 }
  0x6b   : > { %p2743_p1 = scmp.ne.s32.totalorder %s248_s19, %s2742_s23  ;;  %p2751_p7 = scmp.lt.s32.totalorder %s2742_s23, %s2742_s23 }
  0x6d   : > { %p2745_p2 = pnand %p2743_p1, %p2985_p0  ;;  %p2752_p8 = por %p2751_p7, %p2750_p4 }
  0x6f   : > { %p2746_p3 = pneg %p2745_p2 }
  0x71   : > { %p2753_p11 = pnand %p2752_p8, %p2746_p3 }
  0x73   : > { %2756 = shalt.err (!%p2753_p11)
}
  0x74   : > { %s3561_s26 = smov 4   ;;  %s3562_s18 = smov 64  }
  0x75   : > { %2411 = dma.hbm_to_vmem [thread:$0]  (!%p2973_p12), %s3538_s4, 2048, %s248_s19, [#allocation6], %s3562_s18, %s3562_s18, %s3561_s26  }
  0x76   : > { %s2757_s10 = scalar_lea.hbm %s3540_s6, 512 }
  0x77   : > { %p2758_p5 = scmp.ne.s32.totalorder %s3540_s6, %s2757_s10  ;;  %p2764_p10 = scmp.lt.u32.totalorder %s2757_s10, %s3540_s6 }
  0x79   : > { %p2760_p6 = pnand %p2758_p5, %p2985_p0 }
  0x7b   : > { %p2761_p9 = pneg %p2760_p6 }
  0x7d   : > { %p2766_p13 = pnand %p2764_p10, %p2761_p9 }
  0x7f   : > { %2769 = shalt.err (!%p2766_p13)
}
  0x80   : > { %s2770_s9 = scalar_lea.vmem %s275_s21, 512  ;;  %p2778_p4 = scmp.lt.s32.totalorder %s275_s21, %s275_s21 }
  0x81   : > { %p2771_p1 = scmp.ne.s32.totalorder %s275_s21, %s2770_s9  ;;  %p2779_p7 = scmp.lt.s32.totalorder %s2770_s9, %s2770_s9 }
  0x83   : > { %p2773_p2 = pnand %p2771_p1, %p2985_p0  ;;  %p2780_p8 = por %p2779_p7, %p2778_p4 }
  0x85   : > { %p2774_p3 = pneg %p2773_p2 }
  0x87   : > { %p2781_p11 = pnand %p2780_p8, %p2774_p3 }
  0x89   : > { %2784 = shalt.err (!%p2781_p11)
}
  0x8a   : > { %2417 = dma.hbm_to_vmem [thread:$0]  (!%p2973_p12), %s3540_s6, 512, %s275_s21, [#allocation9]  }
  0x8b   : > { %p3563_p5 = scmp.ne.s32.totalorder %s3557_s13, 0 }
  0x8c   : > { %p3564_p6 = scmp.eq.s32.totalorder (!%p3563_p5), %s2937_s28, 0 }
  0x8d   : > { %304 = sbr.rel (%p3563_p5) target bundleno = 926 (0x39e), region = 48 }
  0x94   : > { %2830 = dma.done.wait (%p3564_p6), [#allocation3], 1024   ;;  %p3565_p0 = pmov %p3564_p6 }
  0x96   : > { %2832 = vsyncadd (%p3565_p0), [#allocation3], 4294966272  ;;  %p3566_p9 = pmov %p3565_p0 }
  0x97   : > { %p3567_p10 = pmov %p3565_p0 }
  0x98   : > { %2834 = dma.done.wait (%p3566_p9), [#allocation6], 6144  }
  0x99   : > { %2836 = vsyncadd (%p3567_p10), [#allocation6], 4294961152  ;;  %p3568_p13 = pmov %p3565_p0 }
  0x9a   : > { %p3569_p12 = pmov %p3565_p0 }
  0x9b   : > { %2838 = dma.done.wait (%p3568_p13), [#allocation9], 2560  }
  0x9c   : > { %2840 = vsyncadd (%p3569_p12), [#allocation9], 4294964736  ;;  %s3094_s13 = smul.u32 13, %s2937_s28  ;;  %v2872_v0 = vmov 0   ;;  %v2479_v1 = vld [vmem:[#allocation2 + $0x4] ss:$16 sps:$4 sm:$0xff]  }
  0x9d   : > { %520 = vmatprep.mubr.bf16.mxu0 %v2872_v0  ;;  %621 = vmatprep.mubr.bf16.mxu1 %v2872_v0  ;;  %v2481_v2 = vld [vmem:[#allocation2 + $0xc] ss:$16 sps:$4 sm:$0xff]   ;;  %v2483_v3 = vld [vmem:[#allocation2] ss:$16 sps:$4 sm:$0xff]   ;;  %v2484_v4 = vld [vmem:[#allocation2 + $0x8] ss:$16 sps:$4 sm:$0xff]  }
  0x9e   : > { %p361_p1 = scmp.lt.s32.totalorder %s3094_s13, 24  ;;  %488 = vmatprep.subr.bf16.mxu0 %v2479_v1  ;;  %589 = vmatprep.subr.bf16.mxu1 %v2481_v2  ;;  %v2485_v5 = vld [vmem:[#allocation2 + $0x24] ss:$16 sps:$4 sm:$0xff]   ;;  %v2487_v6 = vld [vmem:[#allocation2 + $0x2c] ss:$16 sps:$4 sm:$0xff]   ;;  %vm466_vm0 = vcmask 261120  }
  0x9f   : > { %489 = vmatpush1.bf16.msra.mxu0 %v2483_v3  ;;  %590 = vmatpush1.bf16.msra.mxu1 %v2484_v4  ;;  %v2489_v7 = vld [vmem:[#allocation2 + $0x20] ss:$16 sps:$4 sm:$0xff]   ;;  %v2490_v8 = vld [vmem:[#allocation2 + $0x28] ss:$16 sps:$4 sm:$0xff]   ;;  %v2493_v15 = vld [vmem:[%s3536_s2 + $0x4] ss:$8 sps:$4 sm:$0xff]  }
  0xa0   : > { %s362_s16 = scalar_select %p361_p1, %s3094_s13, 24  ;;  %490 = vmatprep.subr.bf16.mxu0 %v2485_v5  ;;  %591 = vmatprep.subr.bf16.mxu1 %v2487_v6  ;;  %v2491_v14 = vld [vmem:[%s3536_s2] ss:$8 sps:$4 sm:$0xff]   ;;  %v2496_v17 = vld [vmem:[#allocation5 + $0x4] ss:$8 sps:$4 sm:$0xff]  }
  0xa1   : > { %v2494_v16 = vld [vmem:[#allocation5] ss:$8 sps:$4 sm:$0xff]   ;;  %v2499_v18 = vld [vmem:[%s3536_s2 + $0x14] ss:$8 sps:$4 sm:$0xff]   ;;  %v2497_v19 = vld [vmem:[%s3536_s2 + $0x10] ss:$8 sps:$4 sm:$0xff]  }
  0xa2   : > { %s2137_s29 = sshll.u32 %s362_s16, 3  ;;  %v2502_v20 = vld [vmem:[#allocation5 + $0x14] ss:$8 sps:$4 sm:$0xff]   ;;  %v2500_v22 = vld [vmem:[#allocation5 + $0x10] ss:$8 sps:$4 sm:$0xff]   ;;  %s353_s14 = sand.u32 1, %s2851_s25  }
  0xa3   : > { %s3103_s26 = scalar_lea.vmem %s3534_s0, %s2137_s29  ;;  %491 = vmatpush1.bf16.msra.mxu0 %v2489_v7  ;;  %592 = vmatpush1.bf16.msra.mxu1 %v2490_v8  ;;  %v2505_v23 = vld [vmem:[%s3536_s2 + $0x24] ss:$8 sps:$4 sm:$0xff]   ;;  %v2503_v25 = vld [vmem:[%s3536_s2 + $0x20] ss:$8 sps:$4 sm:$0xff]   ;;  %v2511_v27 = vld [vmem:[%s3536_s2 + $0x34] ss:$8 sps:$4 sm:$0xff]  }
  0xa4   : > { %v376_v9 = vld [vmem:[%s3103_s26] sm:$0xff]  ;;  %v377_v10 = vld [vmem:[%s3103_s26 + $0x8] sm:$0xff]  ;;  %v378_v12 = vld [vmem:[%s3103_s26 + $0x10] sm:$0xff]  ;;  %975 = vmatprep.subr.bf16.mxu0 %v2493_v15  ;;  %1321 = vmatprep.subr.bf16.mxu1 %v2496_v17  ;;  %s2380_s16 = smul.u32 104, %s353_s14  ;;  %s3473_s29 = scalar_lea.sflag [#allocation4], %s353_s14 }
  0xa5   : > { %v389_v11 = vpack.c.bf16 %v377_v10, %v376_v9  ;;  %v379_v13 = vld [vmem:[%s3103_s26 + $0x18] sm:$0xff]  ;;  %v380_v24 = vld [vmem:[%s3103_s26 + $0x20] sm:$0xff]  ;;  %v381_v28 = vld [vmem:[%s3103_s26 + $0x28] sm:$0xff]  ;;  %p3572_p2 = scmp.ne.s32.totalorder %s3554_s11, 0 }
  0xa6   : > { %v390_v21 = vpack.c.bf16 %v379_v13, %v378_v12  ;;  %v2508_v26 = vld [vmem:[#allocation5 + $0x24] ss:$8 sps:$4 sm:$0xff]   ;;  %v2506_v29 = vld [vmem:[#allocation5 + $0x20] ss:$8 sps:$4 sm:$0xff]   ;;  %v2509_v30 = vld [vmem:[%s3536_s2 + $0x30] ss:$8 sps:$4 sm:$0xff]   ;;  %v391_v32 = vpack.c.bf16 %v381_v28, %v380_v24 }
  0xa7   : > { %2146 = vmatmul.mubr.msk.bf16.vlgmr.msra.gmra.mrb[0].mxu0 %vm466_vm0, %v389_v11  ;;  %2153 = vmatmul.mubr.msk.bf16.vlgmr.msra.gmra.mrb[0].mxu1 %vm466_vm0, %v389_v11  ;;  %v2514_v31 = vld [vmem:[#allocation5 + $0x34] ss:$8 sps:$4 sm:$0xff]   ;;  %v2512_v33 = vld [vmem:[#allocation5 + $0x30] ss:$8 sps:$4 sm:$0xff]   ;;  %v2517_v34 = vld [vmem:[%s3536_s2 + $0x44] ss:$8 sps:$4 sm:$0xff]  }
  0xa8   : > { %530 = vmatprep.mubr.bf16.mxu0 %v2872_v0  ;;  %631 = vmatprep.mubr.bf16.mxu1 %v2872_v0  ;;  %v382_v35 = vld [vmem:[%s3103_s26 + $0x30] sm:$0xff]  ;;  %v2515_v36 = vld [vmem:[%s3536_s2 + $0x40] ss:$8 sps:$4 sm:$0xff]   ;;  %v2520_v37 = vld [vmem:[#allocation5 + $0x44] ss:$8 sps:$4 sm:$0xff]   ;;  %s2000_s21 = ssub.s32 (%p3572_p2), 25, %s3094_s13 }
  0xa9   : > { %976 = vmatpush1.bf16.msra.mxu0 %v2491_v14  ;;  %1322 = vmatpush1.bf16.msra.mxu1 %v2494_v16  ;;  %v2523_v38 = vld [vmem:[%s3536_s2 + $0x54] ss:$8 sps:$4 sm:$0xff]   ;;  %v2518_v40 = vld [vmem:[#allocation5 + $0x40] ss:$8 sps:$4 sm:$0xff]   ;;  %v2521_v41 = vld [vmem:[%s3536_s2 + $0x50] ss:$8 sps:$4 sm:$0xff]  }
  0xaa   : > { %977 = vmatprep.subr.bf16.mxu0 %v2499_v18  ;;  %1323 = vmatprep.subr.bf16.mxu1 %v2502_v20  ;;  %v383_v39 = vld [vmem:[%s3103_s26 + $0x38] sm:$0xff]  ;;  %v2529_v45 = vld [vmem:[%s3536_s2 + $0x64] ss:$8 sps:$4 sm:$0xff]   ;;  %v2527_v47 = vld [vmem:[%s3536_s2 + $0x60] ss:$8 sps:$4 sm:$0xff]   ;;  %p2001_p3 = scmp.lt.s32.totalorder (%p3572_p2), %s2000_s21, 13 }
  0xab   : > { %v2526_v42 = vld [vmem:[#allocation5 + $0x54] ss:$8 sps:$4 sm:$0xff]   ;;  %v392_v43 = vpack.c.bf16 %v383_v39, %v382_v35  ;;  %v2524_v44 = vld [vmem:[#allocation5 + $0x50] ss:$8 sps:$4 sm:$0xff]   ;;  %v384_v46 = vld [vmem:[%s3103_s26 + $0x40] sm:$0xff] }
  0xac   : > { %v2532_v48 = vld [vmem:[#allocation5 + $0x64] ss:$8 sps:$4 sm:$0xff]   ;;  %v2535_v49 = vld [vmem:[%s3536_s2 + $0x74] ss:$8 sps:$4 sm:$0xff]   ;;  %v2530_v51 = vld [vmem:[#allocation5 + $0x60] ss:$8 sps:$4 sm:$0xff]  }
  0xad   : > { %978 = vmatpush1.bf16.msra.mxu0 %v2497_v19  ;;  %1324 = vmatpush1.bf16.msra.mxu1 %v2500_v22  ;;  %v385_v50 = vld [vmem:[%s3103_s26 + $0x48] sm:$0xff]  ;;  %v2533_v52 = vld [vmem:[%s3536_s2 + $0x70] ss:$8 sps:$4 sm:$0xff]   ;;  %v2538_v53 = vld [vmem:[#allocation5 + $0x74] ss:$8 sps:$4 sm:$0xff]  }
  0xae   : > { %979 = vmatprep.subr.bf16.mxu0 %v2505_v23  ;;  %1325 = vmatprep.subr.bf16.mxu1 %v2508_v26  ;;  %v393_v54 = vpack.c.bf16 %v385_v50, %v384_v46  ;;  %v2536_v55 = vld [vmem:[#allocation5 + $0x70] ss:$8 sps:$4 sm:$0xff]   ;;  %v2541_v56 = vld [vmem:[%s3536_s2 + $0x84] ss:$8 sps:$4 sm:$0xff]   ;;  %v2539_v58 = vld [vmem:[%s3536_s2 + $0x80] ss:$8 sps:$4 sm:$0xff]  }
  0xaf   : > { %2147 = vmatmul.mubr.msk.bf16.gmra.mrb[4].mxu0 %vm466_vm0, %v390_v21  ;;  %2154 = vmatmul.mubr.msk.bf16.gmra.mrb[4].mxu1 %vm466_vm0, %v390_v21  ;;  %v386_v57 = vld [vmem:[%s3103_s26 + $0x50] sm:$0xff]  ;;  %v2544_v59 = vld [vmem:[#allocation5 + $0x84] ss:$8 sps:$4 sm:$0xff]   ;;  %v387_v61 = vld [vmem:[%s3103_s26 + $0x58] sm:$0xff] }
  0xb0   : > { %540 = vmatprep.mubr.bf16.mxu0 %v2872_v0  ;;  %641 = vmatprep.mubr.bf16.mxu1 %v2872_v0  ;;  %v2547_v60 = vld [vmem:[%s3536_s2 + $0x94] ss:$8 sps:$4 sm:$0xff]   ;;  %v2542_v62 = vld [vmem:[#allocation5 + $0x80] ss:$8 sps:$4 sm:$0xff]   ;;  %v2545_v63 = vld [vmem:[%s3536_s2 + $0x90] ss:$8 sps:$4 sm:$0xff]   ;;  %v394_v2 = vpack.c.bf16 %v387_v61, %v386_v57 }
  0xb1   : > { %980 = vmatpush1.bf16.msra.mxu0 %v2503_v25  ;;  %1326 = vmatpush1.bf16.msra.mxu1 %v2506_v29  ;;  %v2550_v1 = vld [vmem:[#allocation5 + $0x94] ss:$8 sps:$4 sm:$0xff]   ;;  %v2548_v3 = vld [vmem:[#allocation5 + $0x90] ss:$8 sps:$4 sm:$0xff]   ;;  %v2553_v4 = vld [vmem:[%s3536_s2 + $0xa4] ss:$8 sps:$4 sm:$0xff]  }
  0xb2   : > { %981 = vmatprep.subr.bf16.mxu0 %v2511_v27  ;;  %1327 = vmatprep.subr.bf16.mxu1 %v2514_v31  ;;  %v2551_v5 = vld [vmem:[%s3536_s2 + $0xa0] ss:$8 sps:$4 sm:$0xff]   ;;  %v2556_v6 = vld [vmem:[#allocation5 + $0xa4] ss:$8 sps:$4 sm:$0xff]   ;;  %v2559_v7 = vld [vmem:[%s3536_s2 + $0xb4] ss:$8 sps:$4 sm:$0xff]   ;;  %v406_v31 = vlaneseq }
  0xb3   : > { %v388_v8 = vld [vmem:[%s3103_s26 + $0x60] sm:$0xff]  ;;  %v2557_v10 = vld [vmem:[%s3536_s2 + $0xb0] ss:$8 sps:$4 sm:$0xff]   ;;  %v2562_v11 = vld [vmem:[#allocation5 + $0xb4] ss:$8 sps:$4 sm:$0xff]   ;;  %s3407_s26 = scalar_lea.vmem [#allocation11], %s2380_s16 }
  0xb4   : > { %v2554_v9 = vld [vmem:[#allocation5 + $0xa0] ss:$8 sps:$4 sm:$0xff]   ;;  %v2565_v12 = vld [vmem:[%s3536_s2 + $0xc4] ss:$8 sps:$4 sm:$0xff]   ;;  %v395_v13 = vpack.c.bf16 %v388_v8, %v388_v8  ;;  %v2560_v14 = vld [vmem:[#allocation5 + $0xb0] ss:$8 sps:$4 sm:$0xff]  }
  0xb5   : > { %982 = vmatpush1.bf16.msra.mxu0 %v2509_v30  ;;  %1328 = vmatpush1.bf16.msra.mxu1 %v2512_v33  ;;  %v2568_v15 = vld [vmem:[#allocation5 + $0xc4] ss:$8 sps:$4 sm:$0xff]   ;;  %v2571_v16 = vld [vmem:[%s3536_s2 + $0xd4] ss:$8 sps:$4 sm:$0xff]   ;;  %v2566_v17 = vld [vmem:[#allocation5 + $0xc0] ss:$8 sps:$4 sm:$0xff]  }
  0xb6   : > { %983 = vmatprep.subr.bf16.mxu0 %v2517_v34  ;;  %1329 = vmatprep.subr.bf16.mxu1 %v2520_v37  ;;  %v2569_v18 = vld [vmem:[%s3536_s2 + $0xd0] ss:$8 sps:$4 sm:$0xff]   ;;  %v2574_v19 = vld [vmem:[#allocation5 + $0xd4] ss:$8 sps:$4 sm:$0xff]   ;;  %v2577_v21 = vld [vmem:[%s3536_s2 + $0xe4] ss:$8 sps:$4 sm:$0xff]  }
  0xb7   : > { %2148 = vmatmul.mubr.msk.bf16.gmra.mrb[8].mxu0 %vm466_vm0, %v391_v32  ;;  %2155 = vmatmul.mubr.msk.bf16.gmra.mrb[8].mxu1 %vm466_vm0, %v391_v32  ;;  %v2572_v20 = vld [vmem:[#allocation5 + $0xd0] ss:$8 sps:$4 sm:$0xff]   ;;  %v2580_v22 = vld [vmem:[#allocation5 + $0xe4] ss:$8 sps:$4 sm:$0xff]   ;;  %v2575_v23 = vld [vmem:[%s3536_s2 + $0xe0] ss:$8 sps:$4 sm:$0xff]  }
  0xb8   : > { %550 = vmatprep.mubr.bf16.mxu0 %v2872_v0  ;;  %651 = vmatprep.mubr.bf16.mxu1 %v2872_v0  ;;  %v2578_v24 = vld [vmem:[#allocation5 + $0xe0] ss:$8 sps:$4 sm:$0xff]   ;;  %v2583_v25 = vld [vmem:[%s3536_s2 + $0xf4] ss:$8 sps:$4 sm:$0xff]   ;;  %v2581_v27 = vld [vmem:[%s3536_s2 + $0xf0] ss:$8 sps:$4 sm:$0xff]  }
  0xb9   : > { %984 = vmatpush1.bf16.msra.mxu0 %v2515_v36  ;;  %1330 = vmatpush1.bf16.msra.mxu1 %v2518_v40  ;;  %v2586_v26 = vld [vmem:[#allocation5 + $0xf4] ss:$8 sps:$4 sm:$0xff]   ;;  %v2584_v28 = vld [vmem:[#allocation5 + $0xf0] ss:$8 sps:$4 sm:$0xff]   ;;  %v2587_v29 = vld [vmem:[#allocation8 + $0x40] sm:$0xff]   ;;  %v407_v32 = vshrl.u32 %v406_v31, 7 }
  0xba   : > { %985 = vmatprep.subr.bf16.mxu0 %v2523_v38  ;;  %1331 = vmatprep.subr.bf16.mxu1 %v2526_v42  ;;  %v2588_v30 = vld [vmem:[#allocation7 + $0x40] sm:$0xff]  }
  0xbb   : > { %v3241_v33 = vsub.s32 0, %v407_v32  ;;  %v416_v34 = vsub.s32 2, %v407_v32  ;;  %v404_v35 = vld [vmem:[#allocation10] ss:$8 sm:$0xf]  ;;  %v3243_v36 = vsub.s32 1, %v407_v32 }
  0xbc   : > { %v420_v37 = vsub.s32 3, %v407_v32 }
  0xbd   : > { %986 = vmatpush1.bf16.msra.mxu0 %v2521_v41  ;;  %1332 = vmatpush1.bf16.msra.mxu1 %v2524_v44  ;;  %v3246_v38 = vrot.slane %v404_v35, %v3241_v33  ;;  %v3248_v39 = vrot.slane %v404_v35, %v416_v34  ;;  %v3251_v40 = vrot.slane %v404_v35, %v3243_v36  ;;  %v2595_v34 = vld [vmem:[#allocation8 + $0x50] sm:$0xff]  }
  0xbe   : > { %987 = vmatprep.subr.bf16.mxu0 %v2529_v45  ;;  %1333 = vmatprep.subr.bf16.mxu1 %v2532_v48  ;;  %v3253_v41 = vrot.slane %v404_v35, %v420_v37  ;;  %v2596_v35 = vld [vmem:[#allocation7 + $0x50] sm:$0xff]  }
  0xbf   : > { %2149 = vmatmul.mubr.msk.bf16.gmra.mrb[12].mxu0 %vm466_vm0, %v392_v43  ;;  %2156 = vmatmul.mubr.msk.bf16.gmra.mrb[12].mxu1 %vm466_vm0, %v392_v43 }
  0xc0   : > { %560 = vmatprep.mubr.bf16.mxu0 %v2872_v0  ;;  %661 = vmatprep.mubr.bf16.mxu1 %v2872_v0 }
  0xc1   : > { %988 = vmatpush1.bf16.msra.mxu0 %v2527_v47  ;;  %1334 = vmatpush1.bf16.msra.mxu1 %v2530_v51 }
  0xc2   : > { %989 = vmatprep.subr.bf16.mxu0 %v2535_v49  ;;  %1335 = vmatprep.subr.bf16.mxu1 %v2538_v53 }
  0xc5   : > { %990 = vmatpush1.bf16.msra.mxu0 %v2533_v52  ;;  %1336 = vmatpush1.bf16.msra.mxu1 %v2536_v55 }
  0xc6   : > { %991 = vmatprep.subr.bf16.mxu0 %v2541_v56  ;;  %1337 = vmatprep.subr.bf16.mxu1 %v2544_v59 }
  0xc7   : > { %2150 = vmatmul.mubr.msk.bf16.gmra.mrb[16].mxu0 %vm466_vm0, %v393_v54  ;;  %2157 = vmatmul.mubr.msk.bf16.gmra.mrb[16].mxu1 %vm466_vm0, %v393_v54 }
  0xc8   : > { %570 = vmatprep.mubr.bf16.mxu0 %v2872_v0  ;;  %671 = vmatprep.mubr.bf16.mxu1 %v2872_v0 }
  0xc9   : > { %992 = vmatpush1.bf16.msra.mxu0 %v2539_v58  ;;  %1338 = vmatpush1.bf16.msra.mxu1 %v2542_v62 }
  0xca   : > { %993 = vmatprep.subr.bf16.mxu0 %v2547_v60  ;;  %1339 = vmatprep.subr.bf16.mxu1 %v2550_v1 }
  0xcd   : > { %994 = vmatpush1.bf16.msra.mxu0 %v2545_v63  ;;  %1340 = vmatpush1.bf16.msra.mxu1 %v2548_v3 }
  0xce   : > { %995 = vmatprep.subr.bf16.mxu0 %v2553_v4  ;;  %1341 = vmatprep.subr.bf16.mxu1 %v2556_v6 }
  0xcf   : > { %2151 = vmatmul.mubr.msk.bf16.gmra.mrb[20].mxu0 %vm466_vm0, %v394_v2  ;;  %2158 = vmatmul.mubr.msk.bf16.gmra.mrb[20].mxu1 %vm466_vm0, %v394_v2 }
  0xd0   : > { %580 = vmatprep.mubr.bf16.mxu0 %v2872_v0  ;;  %681 = vmatprep.mubr.bf16.mxu1 %v2872_v0  ;;  %v2563_v0 = vld [vmem:[%s3536_s2 + $0xc0] ss:$8 sps:$4 sm:$0xff]  }
  0xd1   : > { %996 = vmatpush1.bf16.msra.mxu0 %v2551_v5  ;;  %1342 = vmatpush1.bf16.msra.mxu1 %v2554_v9  ;;  %v2589_v9 = vld [vmem:[#allocation8] sm:$0xff]  }
  0xd2   : > { %997 = vmatprep.subr.bf16.mxu0 %v2559_v7  ;;  %1343 = vmatprep.subr.bf16.mxu1 %v2562_v11 }
  0xd5   : > { %998 = vmatpush1.bf16.msra.mxu0 %v2557_v10  ;;  %1344 = vmatpush1.bf16.msra.mxu1 %v2560_v14  ;;  %v2590_v10 = vld [vmem:[#allocation7] sm:$0xff]  }
  0xd6   : > { %999 = vmatprep.subr.bf16.mxu0 %v2565_v12  ;;  %1345 = vmatprep.subr.bf16.mxu1 %v2568_v15  ;;  %v2592_v15 = vld [vmem:[#allocation7 + $0x48] sm:$0xff]  }
  0xd7   : > { %2152 = vmatmul.mubr.msk.bf16.gmra.mrb[24].mxu0 %vm466_vm0, %v395_v13  ;;  %2159 = vmatmul.mubr.msk.bf16.gmra.mrb[24].mxu1 %vm466_vm0, %v395_v13 }
  0xd9   : > { %1000 = vmatpush1.bf16.msra.mxu0 %v2563_v0  ;;  %1346 = vmatpush1.bf16.msra.mxu1 %v2566_v17  ;;  %v2591_v0 = vld [vmem:[#allocation8 + $0x48] sm:$0xff]  }
  0xda   : > { %1001 = vmatprep.subr.bf16.mxu0 %v2571_v16  ;;  %1347 = vmatprep.subr.bf16.mxu1 %v2574_v19 }
  0xdd   : > { %1002 = vmatpush1.bf16.msra.mxu0 %v2569_v18  ;;  %1348 = vmatpush1.bf16.msra.mxu1 %v2572_v20 }
  0xde   : > { %1003 = vmatprep.subr.bf16.mxu0 %v2577_v21  ;;  %1349 = vmatprep.subr.bf16.mxu1 %v2580_v22 }
  0xe1   : > { %1004 = vmatpush1.bf16.msra.mxu0 %v2575_v23  ;;  %1350 = vmatpush1.bf16.msra.mxu1 %v2578_v24 }
  0xe2   : > { %1005 = vmatprep.subr.bf16.mxu0 %v2583_v25  ;;  %1351 = vmatprep.subr.bf16.mxu1 %v2586_v26  ;;  %v2593_v26 = vld [vmem:[#allocation8 + $0x8] sm:$0xff]  }
  0xe5   : > { %1006 = vmatpush1.bf16.msra.mxu0 %v2581_v27  ;;  %1352 = vmatpush1.bf16.msra.mxu1 %v2584_v28  ;;  %v2594_v27 = vld [vmem:[#allocation7 + $0x8] sm:$0xff]  }
  0xe6   : > { %2264 = vmatprep.subr.bf16.mxu0 %v2587_v29  ;;  %2322 = vmatprep.subr.bf16.mxu1 %v2588_v30 }
 0x17a   : > { %v522_v42 = vpop.f32.mrb[0].mxu0  ;;  %v623_v43 = vpop.f32.mrb[0].mxu1 }
 0x17b   : > { %v523_v44 = vadd.f32 %v522_v42, %v3246_v38  ;;  %v624_v45 = vadd.f32 %v623_v43, %v3248_v39  ;;  %v524_v46 = vpop.f32.mrb[1].mxu0  ;;  %v625_v47 = vpop.f32.mrb[1].mxu1 }
 0x17c   : > { %v525_v48 = vadd.f32 %v524_v46, %v3251_v40  ;;  %v626_v49 = vadd.f32 %v625_v47, %v3253_v41  ;;  %v526_v50 = vpop.f32.mrb[2].mxu0  ;;  %v627_v51 = vpop.f32.mrb[2].mxu1 }
 0x17d   : > { %v527_v52 = vadd.f32 %v526_v50, %v3246_v38  ;;  %v628_v53 = vadd.f32 %v627_v51, %v3248_v39  ;;  %v528_v54 = vpop.f32.mrb[3].mxu0  ;;  %v629_v55 = vpop.f32.mrb[3].mxu1  ;;  %v690_v58 = vmax.f32 %v523_v44, 0.0  ;;  %v692_v59 = vmax.f32 %v624_v45, 0.0  ;;  %v2597_v51 = vld [vmem:[#allocation8 + $0x10] sm:$0xff]  }
 0x17e   : > { %v529_v56 = vadd.f32 %v528_v54, %v3251_v40  ;;  %v630_v57 = vadd.f32 %v629_v55, %v3253_v41  ;;  %v691_v62 = vmax.f32 %v525_v48, 0.0  ;;  %v693_v63 = vmax.f32 %v626_v49, 0.0 }
 0x17f   : > { %v694_v60 = vmax.f32 %v527_v52, 0.0  ;;  %v696_v61 = vmax.f32 %v628_v53, 0.0  ;;  %v2598_v52 = vld [vmem:[#allocation7 + $0x10] sm:$0xff]  }
 0x180   : > { %v695_v1 = vmax.f32 %v529_v56, 0.0  ;;  %v697_v2 = vmax.f32 %v630_v57, 0.0  ;;  %v2599_v57 = vld [vmem:[#allocation8 + $0x58] sm:$0xff]  }
 0x181   : > { %v742_v3 = vpack.c.bf16 %v694_v60, %v690_v58  ;;  %v756_v4 = vpack.c.bf16 %v696_v61, %v692_v59  ;;  %v2600_v58 = vld [vmem:[#allocation7 + $0x58] sm:$0xff]  }
 0x182   : > { %v743_v5 = vpack.c.bf16 %v695_v1, %v691_v62  ;;  %v757_v6 = vpack.c.bf16 %v697_v2, %v693_v63  ;;  %v532_v7 = vpop.f32.mrb[4].mxu0  ;;  %v633_v8 = vpop.f32.mrb[4].mxu1 }
 0x183   : > { %v533_v11 = vadd.f32 %v532_v7, %v3246_v38  ;;  %v634_v12 = vadd.f32 %v633_v8, %v3248_v39  ;;  %v534_v13 = vpop.f32.mrb[5].mxu0  ;;  %v635_v14 = vpop.f32.mrb[5].mxu1  ;;  %v2602_v7 = vld [vmem:[#allocation7 + $0x18] sm:$0xff]  }
 0x184   : > { %v535_v16 = vadd.f32 %v534_v13, %v3251_v40  ;;  %v636_v17 = vadd.f32 %v635_v14, %v3253_v41  ;;  %v536_v18 = vpop.f32.mrb[6].mxu0  ;;  %v637_v19 = vpop.f32.mrb[6].mxu1  ;;  %1007 = vmatprep.mubr.bf16.mxu0 %v743_v5  ;;  %1353 = vmatprep.mubr.bf16.mxu1 %v757_v6  ;;  %v2601_v6 = vld [vmem:[#allocation8 + $0x18] sm:$0xff]   ;;  %v2604_v13 = vld [vmem:[#allocation7 + $0x60] sm:$0xff]  }
 0x185   : > { %v537_v20 = vadd.f32 %v536_v18, %v3246_v38  ;;  %v638_v21 = vadd.f32 %v637_v19, %v3248_v39  ;;  %v538_v22 = vpop.f32.mrb[7].mxu0  ;;  %v639_v23 = vpop.f32.mrb[7].mxu1  ;;  %1008 = vmatmul.mubr.bf16.vlgmr.msra.gmra.mrb[28].mxu0 %v742_v3  ;;  %1354 = vmatmul.mubr.bf16.vlgmr.msra.gmra.mrb[28].mxu1 %v756_v4  ;;  %v698_v28 = vmax.f32 %v533_v11, 0.0  ;;  %v700_v29 = vmax.f32 %v634_v12, 0.0  ;;  %v2603_v12 = vld [vmem:[#allocation8 + $0x60] sm:$0xff]  }
 0x186   : > { %v539_v24 = vadd.f32 %v538_v22, %v3251_v40  ;;  %v640_v25 = vadd.f32 %v639_v23, %v3253_v41  ;;  %2265 = vmatpush3.bf16.msra.mxu0 %v2589_v9  ;;  %2323 = vmatpush3.bf16.msra.mxu1 %v2590_v10  ;;  %v699_v37 = vmax.f32 %v535_v16, 0.0  ;;  %v701_v42 = vmax.f32 %v636_v17, 0.0  ;;  %v2605_v23 = vld [vmem:[#allocation8 + $0x20] sm:$0xff]  }
 0x187   : > { %v702_v30 = vmax.f32 %v537_v20, 0.0  ;;  %v704_v32 = vmax.f32 %v638_v21, 0.0  ;;  %2266 = vmatprep.subr.bf16.mxu0 %v2591_v0  ;;  %2324 = vmatprep.subr.bf16.mxu1 %v2592_v15 }
 0x188   : > { %v703_v43 = vmax.f32 %v539_v24, 0.0  ;;  %v705_v44 = vmax.f32 %v640_v25, 0.0  ;;  %v2606_v24 = vld [vmem:[#allocation7 + $0x20] sm:$0xff]  }
 0x189   : > { %v744_v45 = vpack.c.bf16 %v702_v30, %v698_v28  ;;  %v758_v46 = vpack.c.bf16 %v704_v32, %v700_v29  ;;  %v2607_v29 = vld [vmem:[#allocation8 + $0x68] sm:$0xff]  }
 0x18a   : > { %v745_v47 = vpack.c.bf16 %v703_v43, %v699_v37  ;;  %v759_v48 = vpack.c.bf16 %v705_v44, %v701_v42  ;;  %v542_v49 = vpop.f32.mrb[8].mxu0  ;;  %v643_v50 = vpop.f32.mrb[8].mxu1  ;;  %2267 = vmatpush3.bf16.msra.mxu0 %v2593_v26  ;;  %2325 = vmatpush3.bf16.msra.mxu1 %v2594_v27  ;;  %v2608_v30 = vld [vmem:[#allocation7 + $0x68] sm:$0xff]  }
 0x18b   : > { %v543_v53 = vadd.f32 %v542_v49, %v3246_v38  ;;  %v644_v54 = vadd.f32 %v643_v50, %v3248_v39  ;;  %v544_v55 = vpop.f32.mrb[9].mxu0  ;;  %v645_v56 = vpop.f32.mrb[9].mxu1  ;;  %2268 = vmatprep.subr.bf16.mxu0 %v2595_v34  ;;  %2326 = vmatprep.subr.bf16.mxu1 %v2596_v35  ;;  %v2610_v49 = vld [vmem:[#allocation7 + $0x28] sm:$0xff]  }
 0x18c   : > { %v545_v59 = vadd.f32 %v544_v55, %v3251_v40  ;;  %v646_v60 = vadd.f32 %v645_v56, %v3253_v41  ;;  %v546_v61 = vpop.f32.mrb[10].mxu0  ;;  %v647_v62 = vpop.f32.mrb[10].mxu1  ;;  %1017 = vmatprep.mubr.bf16.mxu0 %v745_v47  ;;  %1363 = vmatprep.mubr.bf16.mxu1 %v759_v48  ;;  %v2609_v48 = vld [vmem:[#allocation8 + $0x28] sm:$0xff]   ;;  %v2612_v55 = vld [vmem:[#allocation7 + $0x70] sm:$0xff]  }
 0x18d   : > { %v547_v63 = vadd.f32 %v546_v61, %v3246_v38  ;;  %v648_v1 = vadd.f32 %v647_v62, %v3248_v39  ;;  %v548_v2 = vpop.f32.mrb[11].mxu0  ;;  %v649_v3 = vpop.f32.mrb[11].mxu1  ;;  %1018 = vmatmul.mubr.bf16.gmra.mrb[32].mxu0 %v744_v45  ;;  %1364 = vmatmul.mubr.bf16.gmra.mrb[32].mxu1 %v758_v46  ;;  %v706_v8 = vmax.f32 %v543_v53, 0.0  ;;  %v708_v9 = vmax.f32 %v644_v54, 0.0  ;;  %v2611_v54 = vld [vmem:[#allocation8 + $0x70] sm:$0xff]  }
 0x18e   : > { %v549_v4 = vadd.f32 %v548_v2, %v3251_v40  ;;  %v650_v5 = vadd.f32 %v649_v3, %v3253_v41  ;;  %2269 = vmatpush3.bf16.msra.mxu0 %v2597_v51  ;;  %2327 = vmatpush3.bf16.msra.mxu1 %v2598_v52  ;;  %v707_v14 = vmax.f32 %v545_v59, 0.0  ;;  %v709_v0 = vmax.f32 %v646_v60, 0.0  ;;  %v2613_v3 = vld [vmem:[#allocation8 + $0x30] sm:$0xff]  }
 0x18f   : > { %v710_v10 = vmax.f32 %v547_v63, 0.0  ;;  %v712_v11 = vmax.f32 %v648_v1, 0.0  ;;  %2270 = vmatprep.subr.bf16.mxu0 %v2599_v57  ;;  %2328 = vmatprep.subr.bf16.mxu1 %v2600_v58 }
 0x190   : > { %v711_v15 = vmax.f32 %v549_v4, 0.0  ;;  %v713_v16 = vmax.f32 %v650_v5, 0.0  ;;  %v2614_v4 = vld [vmem:[#allocation7 + $0x30] sm:$0xff]  }
 0x191   : > { %v746_v17 = vpack.c.bf16 %v710_v10, %v706_v8  ;;  %v760_v18 = vpack.c.bf16 %v712_v11, %v708_v9 }
 0x192   : > { %v747_v19 = vpack.c.bf16 %v711_v15, %v707_v14  ;;  %v761_v20 = vpack.c.bf16 %v713_v16, %v709_v0  ;;  %v552_v21 = vpop.f32.mrb[12].mxu0  ;;  %v653_v22 = vpop.f32.mrb[12].mxu1  ;;  %2271 = vmatpush3.bf16.msra.mxu0 %v2601_v6  ;;  %2329 = vmatpush3.bf16.msra.mxu1 %v2602_v7 }
 0x193   : > { %v553_v25 = vadd.f32 %v552_v21, %v3246_v38  ;;  %v654_v26 = vadd.f32 %v653_v22, %v3248_v39  ;;  %v554_v27 = vpop.f32.mrb[13].mxu0  ;;  %v655_v28 = vpop.f32.mrb[13].mxu1  ;;  %2272 = vmatprep.subr.bf16.mxu0 %v2603_v12  ;;  %2330 = vmatprep.subr.bf16.mxu1 %v2604_v13 }
 0x194   : > { %v555_v32 = vadd.f32 %v554_v27, %v3251_v40  ;;  %v656_v34 = vadd.f32 %v655_v28, %v3253_v41  ;;  %v556_v35 = vpop.f32.mrb[14].mxu0  ;;  %v657_v37 = vpop.f32.mrb[14].mxu1  ;;  %1027 = vmatprep.mubr.bf16.mxu0 %v747_v19  ;;  %1373 = vmatprep.mubr.bf16.mxu1 %v761_v20 }
 0x195   : > { %v557_v42 = vadd.f32 %v556_v35, %v3246_v38  ;;  %v658_v43 = vadd.f32 %v657_v37, %v3248_v39  ;;  %v558_v44 = vpop.f32.mrb[15].mxu0  ;;  %v659_v45 = vpop.f32.mrb[15].mxu1  ;;  %1028 = vmatmul.mubr.bf16.gmra.mrb[36].mxu0 %v746_v17  ;;  %1374 = vmatmul.mubr.bf16.gmra.mrb[36].mxu1 %v760_v18  ;;  %v714_v50 = vmax.f32 %v553_v25, 0.0  ;;  %v716_v51 = vmax.f32 %v654_v26, 0.0 }
 0x196   : > { %v559_v46 = vadd.f32 %v558_v44, %v3251_v40  ;;  %v660_v47 = vadd.f32 %v659_v45, %v3253_v41  ;;  %2273 = vmatpush3.bf16.msra.mxu0 %v2605_v23  ;;  %2331 = vmatpush3.bf16.msra.mxu1 %v2606_v24  ;;  %v715_v56 = vmax.f32 %v555_v32, 0.0  ;;  %v717_v57 = vmax.f32 %v656_v34, 0.0 }
 0x197   : > { %v718_v52 = vmax.f32 %v557_v42, 0.0  ;;  %v720_v53 = vmax.f32 %v658_v43, 0.0  ;;  %2274 = vmatprep.subr.bf16.mxu0 %v2607_v29  ;;  %2332 = vmatprep.subr.bf16.mxu1 %v2608_v30 }
 0x198   : > { %v719_v58 = vmax.f32 %v559_v46, 0.0  ;;  %v721_v59 = vmax.f32 %v660_v47, 0.0 }
 0x199   : > { %v748_v60 = vpack.c.bf16 %v718_v52, %v714_v50  ;;  %v762_v61 = vpack.c.bf16 %v720_v53, %v716_v51 }
 0x19a   : > { %v749_v62 = vpack.c.bf16 %v719_v58, %v715_v56  ;;  %v763_v63 = vpack.c.bf16 %v721_v59, %v717_v57  ;;  %v562_v1 = vpop.f32.mrb[16].mxu0  ;;  %v663_v2 = vpop.f32.mrb[16].mxu1  ;;  %2275 = vmatpush3.bf16.msra.mxu0 %v2609_v48  ;;  %2333 = vmatpush3.bf16.msra.mxu1 %v2610_v49 }
 0x19b   : > { %v563_v5 = vadd.f32 %v562_v1, %v3246_v38  ;;  %v664_v6 = vadd.f32 %v663_v2, %v3248_v39  ;;  %v564_v7 = vpop.f32.mrb[17].mxu0  ;;  %v665_v8 = vpop.f32.mrb[17].mxu1  ;;  %2276 = vmatprep.subr.bf16.mxu0 %v2611_v54  ;;  %2334 = vmatprep.subr.bf16.mxu1 %v2612_v55 }
 0x19c   : > { %v565_v9 = vadd.f32 %v564_v7, %v3251_v40  ;;  %v666_v10 = vadd.f32 %v665_v8, %v3253_v41  ;;  %v566_v11 = vpop.f32.mrb[18].mxu0  ;;  %v667_v12 = vpop.f32.mrb[18].mxu1  ;;  %1037 = vmatprep.mubr.bf16.mxu0 %v749_v62  ;;  %1383 = vmatprep.mubr.bf16.mxu1 %v763_v63 }
 0x19d   : > { %v567_v13 = vadd.f32 %v566_v11, %v3246_v38  ;;  %v668_v14 = vadd.f32 %v667_v12, %v3248_v39  ;;  %v568_v0 = vpop.f32.mrb[19].mxu0  ;;  %v669_v15 = vpop.f32.mrb[19].mxu1  ;;  %1038 = vmatmul.mubr.bf16.gmra.mrb[40].mxu0 %v748_v60  ;;  %1384 = vmatmul.mubr.bf16.gmra.mrb[40].mxu1 %v762_v61  ;;  %v722_v18 = vmax.f32 %v563_v5, 0.0  ;;  %v724_v19 = vmax.f32 %v664_v6, 0.0 }
 0x19e   : > { %v569_v16 = vadd.f32 %v568_v0, %v3251_v40  ;;  %v670_v17 = vadd.f32 %v669_v15, %v3253_v41  ;;  %2277 = vmatpush3.bf16.msra.mxu0 %v2613_v3  ;;  %2335 = vmatpush3.bf16.msra.mxu1 %v2614_v4  ;;  %v723_v22 = vmax.f32 %v565_v9, 0.0  ;;  %v725_v23 = vmax.f32 %v666_v10, 0.0 }
 0x19f   : > { %v726_v20 = vmax.f32 %v567_v13, 0.0  ;;  %v728_v21 = vmax.f32 %v668_v14, 0.0 }
 0x1a0   : > { %v727_v24 = vmax.f32 %v569_v16, 0.0  ;;  %v729_v25 = vmax.f32 %v670_v17, 0.0 }
 0x1a1   : > { %v750_v26 = vpack.c.bf16 %v726_v20, %v722_v18  ;;  %v764_v27 = vpack.c.bf16 %v728_v21, %v724_v19  ;;  %v2617_v19 = vld [vmem:[#allocation8 + $0x38] sm:$0xff]   ;;  %v803_v21 = vld [vmem:[#allocation10 + $0x1] ss:$8 sm:$0x3] }
 0x1a2   : > { %v751_v28 = vpack.c.bf16 %v727_v24, %v723_v22  ;;  %v765_v29 = vpack.c.bf16 %v729_v25, %v725_v23  ;;  %v572_v30 = vpop.f32.mrb[20].mxu0  ;;  %v673_v32 = vpop.f32.mrb[20].mxu1  ;;  %v2618_v20 = vld [vmem:[#allocation7 + $0x38] sm:$0xff]   ;;  %v3308_v23 = vrot.slane %v803_v21, %v3241_v33  ;;  %v3314_v25 = vrot.slane %v803_v21, %v3243_v36 }
 0x1a3   : > { %v573_v34 = vadd.f32 %v572_v30, %v3246_v38  ;;  %v674_v35 = vadd.f32 %v673_v32, %v3248_v39  ;;  %v574_v37 = vpop.f32.mrb[21].mxu0  ;;  %v675_v42 = vpop.f32.mrb[21].mxu1  ;;  %v1149_v22 = vld [vmem:[#allocation10 + $0x11] ss:$8 sm:$0x3] }
 0x1a4   : > { %v575_v43 = vadd.f32 %v574_v37, %v3251_v40  ;;  %v676_v44 = vadd.f32 %v675_v42, %v3253_v41  ;;  %v576_v45 = vpop.f32.mrb[22].mxu0  ;;  %v677_v46 = vpop.f32.mrb[22].mxu1  ;;  %1047 = vmatprep.mubr.bf16.mxu0 %v751_v28  ;;  %1393 = vmatprep.mubr.bf16.mxu1 %v765_v29  ;;  %v3311_v24 = vrot.slane %v1149_v22, %v3241_v33 }
 0x1a5   : > { %v577_v47 = vadd.f32 %v576_v45, %v3246_v38  ;;  %v678_v48 = vadd.f32 %v677_v46, %v3248_v39  ;;  %v578_v49 = vpop.f32.mrb[23].mxu0  ;;  %v679_v50 = vpop.f32.mrb[23].mxu1  ;;  %1048 = vmatmul.mubr.bf16.gmra.mrb[44].mxu0 %v750_v26  ;;  %1394 = vmatmul.mubr.bf16.gmra.mrb[44].mxu1 %v764_v27  ;;  %v730_v53 = vmax.f32 %v573_v34, 0.0  ;;  %v732_v54 = vmax.f32 %v674_v35, 0.0 }
 0x1a6   : > { %v579_v51 = vadd.f32 %v578_v49, %v3251_v40  ;;  %v680_v52 = vadd.f32 %v679_v50, %v3253_v41  ;;  %v731_v57 = vmax.f32 %v575_v43, 0.0  ;;  %v733_v58 = vmax.f32 %v676_v44, 0.0 }
 0x1a7   : > { %v734_v55 = vmax.f32 %v577_v47, 0.0  ;;  %v736_v56 = vmax.f32 %v678_v48, 0.0  ;;  %v3317_v26 = vrot.slane %v1149_v22, %v3243_v36 }
 0x1a8   : > { %v735_v59 = vmax.f32 %v579_v51, 0.0  ;;  %v737_v60 = vmax.f32 %v680_v52, 0.0 }
 0x1a9   : > { %v752_v61 = vpack.c.bf16 %v734_v55, %v730_v53  ;;  %v766_v62 = vpack.c.bf16 %v736_v56, %v732_v54 }
 0x1aa   : > { %v753_v63 = vpack.c.bf16 %v735_v59, %v731_v57  ;;  %v767_v1 = vpack.c.bf16 %v737_v60, %v733_v58  ;;  %v582_v2 = vpop.f32.mrb[24].mxu0  ;;  %v683_v3 = vpop.f32.mrb[24].mxu1 }
 0x1ab   : > { %v583_v4 = vadd.f32 %v582_v2, %v3246_v38  ;;  %v684_v5 = vadd.f32 %v683_v3, %v3248_v39  ;;  %v584_v6 = vpop.f32.mrb[25].mxu0  ;;  %v685_v7 = vpop.f32.mrb[25].mxu1 }
 0x1ac   : > { %v585_v8 = vadd.f32 %v584_v6, %v3251_v40  ;;  %v686_v9 = vadd.f32 %v685_v7, %v3253_v41  ;;  %1057 = vmatprep.mubr.bf16.mxu0 %v753_v63  ;;  %1403 = vmatprep.mubr.bf16.mxu1 %v767_v1  ;;  %v586_v10 = vpop.f32.mrb[26].mxu0  ;;  %v687_v11 = vpop.f32.mrb[26].mxu1  ;;  %v2615_v40 = vld [vmem:[#allocation8 + $0x78] sm:$0xff]  }
 0x1ad   : > { %v738_v12 = vmax.f32 %v583_v4, 0.0  ;;  %v740_v13 = vmax.f32 %v684_v5, 0.0  ;;  %1058 = vmatmul.mubr.bf16.gmra.mrb[48].mxu0 %v752_v61  ;;  %1404 = vmatmul.mubr.bf16.gmra.mrb[48].mxu1 %v766_v62  ;;  %v587_v14 = vpop.f32.mrb[27].mxu0  ;;  %v688_v0 = vpop.f32.mrb[27].mxu1  ;;  %v2616_v41 = vld [vmem:[#allocation7 + $0x78] sm:$0xff]  }
 0x1ae   : > { %v739_v15 = vmax.f32 %v585_v8, 0.0  ;;  %v741_v38 = vmax.f32 %v686_v9, 0.0  ;;  %2278 = vmatprep.subr.bf16.mxu0 %v2615_v40  ;;  %2336 = vmatprep.subr.bf16.mxu1 %v2616_v41 }
 0x1af   : > { %v754_v17 = vpack.c.bf16 %v738_v12, %v738_v12  ;;  %v768_v18 = vpack.c.bf16 %v740_v13, %v740_v13  ;;  %2279 = vmatpush3.bf16.msra.mxu0 %v2617_v19  ;;  %2337 = vmatpush3.bf16.msra.mxu1 %v2618_v20 }
 0x1b0   : > { %v755_v16 = vpack.c.bf16 %v739_v15, %v739_v15  ;;  %v769_v39 = vpack.c.bf16 %v741_v38, %v741_v38 }
 0x1b2   : > { %1067 = vmatprep.mubr.bf16.mxu0 %v755_v16  ;;  %1413 = vmatprep.mubr.bf16.mxu1 %v769_v39 }
 0x1b5   : > { %1068 = vmatmul.mubr.bf16.gmra.mrb[52].mxu0 %v754_v17  ;;  %1414 = vmatmul.mubr.bf16.gmra.mrb[52].mxu1 %v768_v18 }
 0x258   : > { %v1009_v27 = vpop.f32.mrb[28].mxu0  ;;  %v1355_v28 = vpop.f32.mrb[28].mxu1 }
 0x259   : > { %v1010_v29 = vadd.f32 %v1009_v27, %v3308_v23  ;;  %v1356_v30 = vadd.f32 %v1355_v28, %v3311_v24  ;;  %v1011_v32 = vpop.f32.mrb[29].mxu0  ;;  %v1357_v34 = vpop.f32.mrb[29].mxu1 }
 0x25a   : > { %v1012_v35 = vadd.f32 %v1011_v32, %v3314_v25  ;;  %v1358_v37 = vadd.f32 %v1357_v34, %v3317_v26  ;;  %v1013_v33 = vpop.f32.mrb[30].mxu0  ;;  %v1359_v42 = vpop.f32.mrb[30].mxu1 }
 0x25b   : > { %v1014_v43 = vadd.f32 %v1013_v33, %v3308_v23  ;;  %v1360_v44 = vadd.f32 %v1359_v42, %v3311_v24  ;;  %v1015_v36 = vpop.f32.mrb[31].mxu0  ;;  %v1361_v45 = vpop.f32.mrb[31].mxu1  ;;  %v1076_v48 = vmax.f32 %v1010_v29, 0.0  ;;  %v1422_v49 = vmax.f32 %v1356_v30, 0.0 }
 0x25c   : > { %v1016_v46 = vadd.f32 %v1015_v36, %v3314_v25  ;;  %v1362_v47 = vadd.f32 %v1361_v45, %v3317_v26  ;;  %v1077_v52 = vmax.f32 %v1012_v35, 0.0  ;;  %v1423_v53 = vmax.f32 %v1358_v37, 0.0 }
 0x25d   : > { %v1078_v50 = vmax.f32 %v1014_v43, 0.0  ;;  %v1424_v51 = vmax.f32 %v1360_v44, 0.0 }
 0x25e   : > { %v1079_v54 = vmax.f32 %v1016_v46, 0.0  ;;  %v1425_v55 = vmax.f32 %v1362_v47, 0.0 }
 0x25f   : > { %v1102_v56 = vpack.c.bf16 %v1078_v50, %v1076_v48  ;;  %v1448_v57 = vpack.c.bf16 %v1424_v51, %v1422_v49 }
 0x260   : > { %v1103_v58 = vpack.c.bf16 %v1079_v54, %v1077_v52  ;;  %v1449_v59 = vpack.c.bf16 %v1425_v55, %v1423_v53  ;;  %v1019_v60 = vpop.f32.mrb[32].mxu0  ;;  %v1365_v61 = vpop.f32.mrb[32].mxu1 }
 0x261   : > { %v1020_v62 = vadd.f32 %v1019_v60, %v3308_v23  ;;  %v1366_v63 = vadd.f32 %v1365_v61, %v3311_v24  ;;  %v1021_v1 = vpop.f32.mrb[33].mxu0  ;;  %v1367_v2 = vpop.f32.mrb[33].mxu1 }
 0x262   : > { %v1022_v3 = vadd.f32 %v1021_v1, %v3314_v25  ;;  %v1368_v4 = vadd.f32 %v1367_v2, %v3317_v26  ;;  %v1023_v5 = vpop.f32.mrb[34].mxu0  ;;  %v1369_v6 = vpop.f32.mrb[34].mxu1  ;;  %1654 = vmatprep.mubr.bf16.mxu0 %v1449_v59  ;;  %1838 = vmatprep.mubr.bf16.mxu1 %v1103_v58 }
 0x263   : > { %v1024_v7 = vadd.f32 %v1023_v5, %v3308_v23  ;;  %v1370_v8 = vadd.f32 %v1369_v6, %v3311_v24  ;;  %v1025_v9 = vpop.f32.mrb[35].mxu0  ;;  %v1371_v10 = vpop.f32.mrb[35].mxu1  ;;  %1655 = vmatmul.mubr.bf16.vlgmr.msra.gmra.mrb[56].mxu0 %v1448_v57  ;;  %1839 = vmatmul.mubr.bf16.vlgmr.msra.gmra.mrb[56].mxu1 %v1102_v56  ;;  %v1080_v13 = vmax.f32 %v1020_v62, 0.0  ;;  %v1426_v14 = vmax.f32 %v1366_v63, 0.0 }
 0x264   : > { %v1026_v11 = vadd.f32 %v1025_v9, %v3314_v25  ;;  %v1372_v12 = vadd.f32 %v1371_v10, %v3317_v26  ;;  %v1081_v38 = vmax.f32 %v1022_v3, 0.0  ;;  %v1427_v16 = vmax.f32 %v1368_v4, 0.0 }
 0x265   : > { %v1082_v0 = vmax.f32 %v1024_v7, 0.0  ;;  %v1428_v15 = vmax.f32 %v1370_v8, 0.0 }
 0x266   : > { %v1083_v39 = vmax.f32 %v1026_v11, 0.0  ;;  %v1429_v17 = vmax.f32 %v1372_v12, 0.0 }
 0x267   : > { %v1104_v18 = vpack.c.bf16 %v1082_v0, %v1080_v13  ;;  %v1450_v40 = vpack.c.bf16 %v1428_v15, %v1426_v14 }
 0x268   : > { %v1105_v41 = vpack.c.bf16 %v1083_v39, %v1081_v38  ;;  %v1451_v19 = vpack.c.bf16 %v1429_v17, %v1427_v16  ;;  %v1029_v20 = vpop.f32.mrb[36].mxu0  ;;  %v1375_v21 = vpop.f32.mrb[36].mxu1 }
 0x269   : > { %v1030_v22 = vadd.f32 %v1029_v20, %v3308_v23  ;;  %v1376_v27 = vadd.f32 %v1375_v21, %v3311_v24  ;;  %v1031_v28 = vpop.f32.mrb[37].mxu0  ;;  %v1377_v29 = vpop.f32.mrb[37].mxu1 }
 0x26a   : > { %v1032_v30 = vadd.f32 %v1031_v28, %v3314_v25  ;;  %v1378_v32 = vadd.f32 %v1377_v29, %v3317_v26  ;;  %v1033_v34 = vpop.f32.mrb[38].mxu0  ;;  %v1379_v35 = vpop.f32.mrb[38].mxu1  ;;  %1662 = vmatprep.mubr.bf16.mxu0 %v1451_v19  ;;  %1846 = vmatprep.mubr.bf16.mxu1 %v1105_v41 }
 0x26b   : > { %v1034_v37 = vadd.f32 %v1033_v34, %v3308_v23  ;;  %v1380_v33 = vadd.f32 %v1379_v35, %v3311_v24  ;;  %v1035_v42 = vpop.f32.mrb[39].mxu0  ;;  %v1381_v43 = vpop.f32.mrb[39].mxu1  ;;  %1663 = vmatmul.mubr.bf16.gmra.mrb[60].mxu0 %v1450_v40  ;;  %1847 = vmatmul.mubr.bf16.gmra.mrb[60].mxu1 %v1104_v18  ;;  %v1084_v45 = vmax.f32 %v1030_v22, 0.0  ;;  %v1430_v46 = vmax.f32 %v1376_v27, 0.0 }
 0x26c   : > { %v1036_v44 = vadd.f32 %v1035_v42, %v3314_v25  ;;  %v1382_v36 = vadd.f32 %v1381_v43, %v3317_v26  ;;  %v1085_v49 = vmax.f32 %v1032_v30, 0.0  ;;  %v1431_v50 = vmax.f32 %v1378_v32, 0.0 }
 0x26d   : > { %v1086_v47 = vmax.f32 %v1034_v37, 0.0  ;;  %v1432_v48 = vmax.f32 %v1380_v33, 0.0 }
 0x26e   : > { %v1087_v51 = vmax.f32 %v1036_v44, 0.0  ;;  %v1433_v52 = vmax.f32 %v1382_v36, 0.0 }
 0x26f   : > { %v1106_v53 = vpack.c.bf16 %v1086_v47, %v1084_v45  ;;  %v1452_v54 = vpack.c.bf16 %v1432_v48, %v1430_v46 }
 0x270   : > { %v1107_v55 = vpack.c.bf16 %v1087_v51, %v1085_v49  ;;  %v1453_v56 = vpack.c.bf16 %v1433_v52, %v1431_v50  ;;  %v1039_v57 = vpop.f32.mrb[40].mxu0  ;;  %v1385_v58 = vpop.f32.mrb[40].mxu1 }
 0x271   : > { %v1040_v59 = vadd.f32 %v1039_v57, %v3308_v23  ;;  %v1386_v60 = vadd.f32 %v1385_v58, %v3311_v24  ;;  %v1041_v61 = vpop.f32.mrb[41].mxu0  ;;  %v1387_v62 = vpop.f32.mrb[41].mxu1 }
 0x272   : > { %v1042_v63 = vadd.f32 %v1041_v61, %v3314_v25  ;;  %v1388_v1 = vadd.f32 %v1387_v62, %v3317_v26  ;;  %v1043_v2 = vpop.f32.mrb[42].mxu0  ;;  %v1389_v3 = vpop.f32.mrb[42].mxu1  ;;  %1670 = vmatprep.mubr.bf16.mxu0 %v1453_v56  ;;  %1854 = vmatprep.mubr.bf16.mxu1 %v1107_v55 }
 0x273   : > { %v1044_v4 = vadd.f32 %v1043_v2, %v3308_v23  ;;  %v1390_v5 = vadd.f32 %v1389_v3, %v3311_v24  ;;  %v1045_v6 = vpop.f32.mrb[43].mxu0  ;;  %v1391_v7 = vpop.f32.mrb[43].mxu1  ;;  %1671 = vmatmul.mubr.bf16.gmra.mrb[64].mxu0 %v1452_v54  ;;  %1855 = vmatmul.mubr.bf16.gmra.mrb[64].mxu1 %v1106_v53  ;;  %v1088_v10 = vmax.f32 %v1040_v59, 0.0  ;;  %v1434_v11 = vmax.f32 %v1386_v60, 0.0 }
 0x274   : > { %v1046_v8 = vadd.f32 %v1045_v6, %v3314_v25  ;;  %v1392_v9 = vadd.f32 %v1391_v7, %v3317_v26  ;;  %v1089_v14 = vmax.f32 %v1042_v63, 0.0  ;;  %v1435_v0 = vmax.f32 %v1388_v1, 0.0 }
 0x275   : > { %v1090_v12 = vmax.f32 %v1044_v4, 0.0  ;;  %v1436_v13 = vmax.f32 %v1390_v5, 0.0 }
 0x276   : > { %v1091_v15 = vmax.f32 %v1046_v8, 0.0  ;;  %v1437_v38 = vmax.f32 %v1392_v9, 0.0 }
 0x277   : > { %v1108_v16 = vpack.c.bf16 %v1090_v12, %v1088_v10  ;;  %v1454_v39 = vpack.c.bf16 %v1436_v13, %v1434_v11 }
 0x278   : > { %v1109_v17 = vpack.c.bf16 %v1091_v15, %v1089_v14  ;;  %v1455_v18 = vpack.c.bf16 %v1437_v38, %v1435_v0  ;;  %v1049_v40 = vpop.f32.mrb[44].mxu0  ;;  %v1395_v41 = vpop.f32.mrb[44].mxu1 }
 0x279   : > { %v1050_v19 = vadd.f32 %v1049_v40, %v3308_v23  ;;  %v1396_v20 = vadd.f32 %v1395_v41, %v3311_v24  ;;  %v1051_v21 = vpop.f32.mrb[45].mxu0  ;;  %v1397_v22 = vpop.f32.mrb[45].mxu1 }
 0x27a   : > { %v1052_v27 = vadd.f32 %v1051_v21, %v3314_v25  ;;  %v1398_v28 = vadd.f32 %v1397_v22, %v3317_v26  ;;  %v1053_v29 = vpop.f32.mrb[46].mxu0  ;;  %v1399_v30 = vpop.f32.mrb[46].mxu1  ;;  %1678 = vmatprep.mubr.bf16.mxu0 %v1455_v18  ;;  %1862 = vmatprep.mubr.bf16.mxu1 %v1109_v17 }
 0x27b   : > { %v1054_v32 = vadd.f32 %v1053_v29, %v3308_v23  ;;  %v1400_v34 = vadd.f32 %v1399_v30, %v3311_v24  ;;  %v1055_v35 = vpop.f32.mrb[47].mxu0  ;;  %v1401_v37 = vpop.f32.mrb[47].mxu1  ;;  %1679 = vmatmul.mubr.bf16.gmra.mrb[68].mxu0 %v1454_v39  ;;  %1863 = vmatmul.mubr.bf16.gmra.mrb[68].mxu1 %v1108_v16  ;;  %v1092_v43 = vmax.f32 %v1050_v19, 0.0  ;;  %v1438_v44 = vmax.f32 %v1396_v20, 0.0 }
 0x27c   : > { %v1056_v33 = vadd.f32 %v1055_v35, %v3314_v25  ;;  %v1402_v42 = vadd.f32 %v1401_v37, %v3317_v26  ;;  %v1093_v46 = vmax.f32 %v1052_v27, 0.0  ;;  %v1439_v47 = vmax.f32 %v1398_v28, 0.0 }
 0x27d   : > { %v1094_v36 = vmax.f32 %v1054_v32, 0.0  ;;  %v1440_v45 = vmax.f32 %v1400_v34, 0.0 }
 0x27e   : > { %v1095_v48 = vmax.f32 %v1056_v33, 0.0  ;;  %v1441_v49 = vmax.f32 %v1402_v42, 0.0 }
 0x27f   : > { %v1110_v50 = vpack.c.bf16 %v1094_v36, %v1092_v43  ;;  %v1456_v51 = vpack.c.bf16 %v1440_v45, %v1438_v44 }
 0x280   : > { %v1111_v52 = vpack.c.bf16 %v1095_v48, %v1093_v46  ;;  %v1457_v53 = vpack.c.bf16 %v1441_v49, %v1439_v47  ;;  %v1059_v54 = vpop.f32.mrb[48].mxu0  ;;  %v1405_v55 = vpop.f32.mrb[48].mxu1  ;;  %v3372_v47 = vld [vmem:[#allocation10 + $0x2] ss:$0 sm:$0xff] }
 0x281   : > { %v1060_v56 = vadd.f32 %v1059_v54, %v3308_v23  ;;  %v1406_v57 = vadd.f32 %v1405_v55, %v3311_v24  ;;  %v1061_v58 = vpop.f32.mrb[49].mxu0  ;;  %v1407_v59 = vpop.f32.mrb[49].mxu1 }
 0x282   : > { %v1062_v60 = vadd.f32 %v1061_v58, %v3314_v25  ;;  %v1408_v61 = vadd.f32 %v1407_v59, %v3317_v26  ;;  %v1063_v62 = vpop.f32.mrb[50].mxu0  ;;  %v1409_v63 = vpop.f32.mrb[50].mxu1  ;;  %1686 = vmatprep.mubr.bf16.mxu0 %v1457_v53  ;;  %1870 = vmatprep.mubr.bf16.mxu1 %v1111_v52 }
 0x283   : > { %v1064_v1 = vadd.f32 %v1063_v62, %v3308_v23  ;;  %v1410_v2 = vadd.f32 %v1409_v63, %v3311_v24  ;;  %v1065_v3 = vpop.f32.mrb[51].mxu0  ;;  %v1411_v4 = vpop.f32.mrb[51].mxu1  ;;  %1687 = vmatmul.mubr.bf16.gmra.mrb[72].mxu0 %v1456_v51  ;;  %1871 = vmatmul.mubr.bf16.gmra.mrb[72].mxu1 %v1110_v50  ;;  %v1096_v7 = vmax.f32 %v1060_v56, 0.0  ;;  %v1442_v8 = vmax.f32 %v1406_v57, 0.0 }
 0x284   : > { %v1066_v5 = vadd.f32 %v1065_v3, %v3314_v25  ;;  %v1412_v6 = vadd.f32 %v1411_v4, %v3317_v26  ;;  %v1097_v11 = vmax.f32 %v1062_v60, 0.0  ;;  %v1443_v12 = vmax.f32 %v1408_v61, 0.0 }
 0x285   : > { %v1098_v9 = vmax.f32 %v1064_v1, 0.0  ;;  %v1444_v10 = vmax.f32 %v1410_v2, 0.0 }
 0x286   : > { %v1099_v13 = vmax.f32 %v1066_v5, 0.0  ;;  %v1445_v14 = vmax.f32 %v1412_v6, 0.0 }
 0x287   : > { %v1112_v0 = vpack.c.bf16 %v1098_v9, %v1096_v7  ;;  %v1458_v15 = vpack.c.bf16 %v1444_v10, %v1442_v8 }
 0x288   : > { %v1113_v38 = vpack.c.bf16 %v1099_v13, %v1097_v11  ;;  %v1459_v16 = vpack.c.bf16 %v1445_v14, %v1443_v12  ;;  %v1069_v39 = vpop.f32.mrb[52].mxu0  ;;  %v1415_v17 = vpop.f32.mrb[52].mxu1  ;;  %v1909_v13 = vand.u32 127, %v406_v31 }
 0x289   : > { %v1070_v18 = vadd.f32 %v1069_v39, %v3308_v23  ;;  %v1416_v40 = vadd.f32 %v1415_v17, %v3311_v24  ;;  %v1071_v41 = vpop.f32.mrb[53].mxu0  ;;  %v1417_v19 = vpop.f32.mrb[53].mxu1 }
 0x28a   : > { %v1072_v20 = vadd.f32 %v1071_v41, %v3314_v25  ;;  %v1418_v21 = vadd.f32 %v1417_v19, %v3317_v26  ;;  %v1073_v22 = vpop.f32.mrb[54].mxu0  ;;  %v1419_v27 = vpop.f32.mrb[54].mxu1  ;;  %1694 = vmatprep.mubr.bf16.mxu0 %v1459_v16  ;;  %1878 = vmatprep.mubr.bf16.mxu1 %v1113_v38  ;;  %vm1910_vm1 = vcmp.ge.s32.totalorder %v1909_v13, 2  ;;  %vm1911_vm2 = vcmp.lt.s32.totalorder %v1909_v13, 4 }
 0x28b   : > { %v1074_v28 = vpop.f32.mrb[55].mxu0  ;;  %v1420_v29 = vpop.f32.mrb[55].mxu1  ;;  %1695 = vmatmul.mubr.bf16.gmra.mrb[76].mxu0 %v1458_v15  ;;  %1879 = vmatmul.mubr.bf16.gmra.mrb[76].mxu1 %v1112_v0  ;;  %v1100_v23 = vmax.f32 %v1070_v18, 0.0  ;;  %v1446_v34 = vmax.f32 %v1416_v40, 0.0  ;;  %vm3393_vm3 = vmand %vm1910_vm1, %vm1911_vm2 }
 0x28c   : > { %v1101_v30 = vmax.f32 %v1072_v20, 0.0  ;;  %v1447_v32 = vmax.f32 %v1418_v21, 0.0 }
 0x28d   : > { %v1114_v25 = vpack.c.bf16 %v1100_v23, %v1100_v23  ;;  %v1460_v37 = vpack.c.bf16 %v1446_v34, %v1446_v34 }
 0x28e   : > { %v1115_v24 = vpack.c.bf16 %v1101_v30, %v1101_v30  ;;  %v1461_v35 = vpack.c.bf16 %v1447_v32, %v1447_v32 }
 0x290   : > { %1702 = vmatprep.mubr.bf16.mxu0 %v1461_v35  ;;  %1886 = vmatprep.mubr.bf16.mxu1 %v1115_v24 }
 0x293   : > { %1703 = vmatmul.mubr.bf16.gmra.mrb[80].mxu0 %v1460_v37  ;;  %1887 = vmatmul.mubr.bf16.gmra.mrb[80].mxu1 %v1114_v25 }
 0x336   : > { %v2280_v26 = vpop.f32.mrb[56].mxu0  ;;  %v2338_v33 = vpop.f32.mrb[56].mxu1 }
 0x337   : > { %v2281_v42 = vpop.f32.mrb[57].mxu0  ;;  %v2339_v43 = vpop.f32.mrb[57].mxu1 }
 0x338   : > { %v2282_v44 = vadd.f32 %v2281_v42, %v2280_v26  ;;  %v2340_v36 = vadd.f32 %v2339_v43, %v2338_v33  ;;  %v2283_v45 = vpop.f32.mrb[58].mxu0  ;;  %v2341_v46 = vpop.f32.mrb[58].mxu1 }
 0x339   : > { %v2284_v48 = vpop.f32.mrb[59].mxu0  ;;  %v2342_v49 = vpop.f32.mrb[59].mxu1 }
 0x33a   : > { %v1841_v50 = vadd.f32 %v2340_v36, %v2282_v44  ;;  %v2285_v51 = vadd.f32 %v2284_v48, %v2283_v45  ;;  %v2343_v52 = vadd.f32 %v2342_v49, %v2341_v46 }
 0x33c   : > { %v3375_v53 = vadd.f32 %v3372_v47, %v1841_v50  ;;  %v1844_v54 = vadd.f32 %v2343_v52, %v2285_v51 }
 0x33e   : > { %v1913_v55 = vmax.f32 %v3375_v53, -20.0  ;;  %v3379_v56 = vadd.f32 %v3372_v47, %v1844_v54  ;;  %v2286_v57 = vpop.f32.mrb[60].mxu0  ;;  %v2344_v58 = vpop.f32.mrb[60].mxu1 }
 0x33f   : > { %v2287_v59 = vpop.f32.mrb[61].mxu0  ;;  %v2345_v60 = vpop.f32.mrb[61].mxu1 }
 0x340   : > { %v1926_v61 = vmin.f32 %v1913_v55, 2.0  ;;  %v1914_v62 = vmax.f32 %v3379_v56, -20.0  ;;  %v2288_v63 = vadd.f32 %v2287_v59, %v2286_v57  ;;  %v2346_v1 = vadd.f32 %v2345_v60, %v2344_v58  ;;  %v2289_v2 = vpop.f32.mrb[62].mxu0  ;;  %v2347_v3 = vpop.f32.mrb[62].mxu1 }
 0x341   : > { %v2290_v4 = vpop.f32.mrb[63].mxu0  ;;  %v2348_v5 = vpop.f32.mrb[63].mxu1 }
 0x342   : > { %v1939_v6 = vmul.f32 1.442695, %v1926_v61  ;;  %v1927_v7 = vmin.f32 %v1914_v62, 2.0  ;;  %v1849_v8 = vadd.f32 %v2346_v1, %v2288_v63  ;;  %v2291_v9 = vadd.f32 %v2290_v4, %v2289_v2 }
 0x343   : > { %v2349_v10 = vadd.f32 %v2348_v5, %v2347_v3 }
 0x344   : > { %2619 = vpow2.f32 %v1939_v6  ;;  %v1941_v11 = vmul.f32 1.442695, %v1927_v7  ;;  %v3383_v12 = vadd.f32 %v3372_v47, %v1849_v8 }
 0x345   : > { %v1852_v14 = vadd.f32 %v2349_v10, %v2291_v9 }
 0x346   : > { %2621 = vpow2.f32 %v1941_v11  ;;  %v1915_v0 = vmax.f32 %v3383_v12, -20.0  ;;  %v2292_v15 = vpop.f32.mrb[64].mxu0  ;;  %v2350_v38 = vpop.f32.mrb[64].mxu1 }
 0x347   : > { %v3388_v16 = vadd.f32 %v3372_v47, %v1852_v14  ;;  %v2293_v39 = vpop.f32.mrb[65].mxu0  ;;  %v2351_v17 = vpop.f32.mrb[65].mxu1 }
 0x348   : > { %v1928_v18 = vmin.f32 %v1915_v0, 2.0  ;;  %v2294_v40 = vadd.f32 %v2293_v39, %v2292_v15  ;;  %v2352_v41 = vadd.f32 %v2351_v17, %v2350_v38  ;;  %v2295_v19 = vpop.f32.mrb[66].mxu0  ;;  %v2353_v20 = vpop.f32.mrb[66].mxu1 }
 0x349   : > { %v1916_v31 = vmax.f32 %v3388_v16, -20.0  ;;  %v2296_v21 = vpop.f32.mrb[67].mxu0  ;;  %v2354_v22 = vpop.f32.mrb[67].mxu1 }
 0x34a   : > { %v1943_v27 = vmul.f32 1.442695, %v1928_v18  ;;  %v1857_v28 = vadd.f32 %v2352_v41, %v2294_v40  ;;  %v2297_v29 = vadd.f32 %v2296_v21, %v2295_v19  ;;  %v2355_v30 = vadd.f32 %v2354_v22, %v2353_v20 }
 0x34b   : > { %v1929_v32 = vmin.f32 %v1916_v31, 2.0 }
 0x34c   : > { %2623 = vpow2.f32 %v1943_v27  ;;  %v3398_v34 = vadd.f32 %v3372_v47, %v1857_v28  ;;  %v1860_v24 = vadd.f32 %v2355_v30, %v2297_v29 }
 0x34d   : > { %v1945_v35 = vmul.f32 1.442695, %v1929_v32 }
 0x34e   : > { %v2620_v25 = vpop.eup %2619  ;;  %v1917_v37 = vmax.f32 %v3398_v34, -20.0  ;;  %v3402_v26 = vadd.f32 %v3372_v47, %v1860_v24  ;;  %v2298_v33 = vpop.f32.mrb[68].mxu0 }
 0x34f   : > { %v2356_v42 = vpop.f32.mrb[68].mxu1  ;;  %v1965_v43 = vsel %vm3393_vm3, %v2620_v25, %v3375_v53  ;;  %2625 = vpow2.f32 %v1945_v35  ;;  %v2299_v44 = vpop.f32.mrb[69].mxu0 }
 0x350   : > { %v2357_v36 = vpop.f32.mrb[69].mxu1  ;;  %v2622_v45 = vpop.eup %2621  ;;  %1978 = vst [vmem:[%s3407_s26] sm:$0xff] %v1965_v43  ;;  %v1930_v46 = vmin.f32 %v1917_v37, 2.0  ;;  %v1918_v48 = vmax.f32 %v3402_v26, -20.0  ;;  %v2300_v49 = vadd.f32 %v2299_v44, %v2298_v33 }
 0x351   : > { %v2358_v50 = vadd.f32 %v2357_v36, %v2356_v42  ;;  %v2301_v51 = vpop.f32.mrb[70].mxu0  ;;  %v2359_v52 = vpop.f32.mrb[70].mxu1  ;;  %v1966_v53 = vsel %vm3393_vm3, %v2622_v45, %v3379_v56 }
 0x352   : > { %v2302_v54 = vpop.f32.mrb[71].mxu0  ;;  %v2360_v55 = vpop.f32.mrb[71].mxu1  ;;  %1979 = vst [vmem:[%s3407_s26 + $0x8] sm:$0xff] %v1966_v53  ;;  %v1947_v57 = vmul.f32 1.442695, %v1930_v46  ;;  %v1931_v58 = vmin.f32 %v1918_v48, 2.0 }
 0x353   : > { %v1865_v59 = vadd.f32 %v2358_v50, %v2300_v49  ;;  %v2303_v60 = vadd.f32 %v2302_v54, %v2301_v51  ;;  %v2361_v61 = vadd.f32 %v2360_v55, %v2359_v52 }
 0x354   : > { %2627 = vpow2.f32 %v1947_v57  ;;  %v1949_v62 = vmul.f32 1.442695, %v1931_v58 }
 0x355   : > { %v3416_v63 = vadd.f32 %v3372_v47, %v1865_v59  ;;  %v1868_v1 = vadd.f32 %v2361_v61, %v2303_v60 }
 0x356   : > { %v2624_v2 = vpop.eup %2623  ;;  %2629 = vpow2.f32 %v1949_v62  ;;  %v2304_v56 = vpop.f32.mrb[72].mxu0 }
 0x357   : > { %v1919_v3 = vmax.f32 %v3416_v63, -20.0  ;;  %v2362_v4 = vpop.f32.mrb[72].mxu1  ;;  %v1967_v5 = vsel %vm3393_vm3, %v2624_v2, %v3383_v12  ;;  %v3423_v6 = vadd.f32 %v3372_v47, %v1868_v1  ;;  %v2305_v7 = vpop.f32.mrb[73].mxu0 }
 0x358   : > { %v2363_v8 = vpop.f32.mrb[73].mxu1  ;;  %1980 = vst [vmem:[%s3407_s26 + $0x10] sm:$0xff] %v1967_v5  ;;  %v2306_v10 = vadd.f32 %v2305_v7, %v2304_v56  ;;  %v2307_v13 = vpop.f32.mrb[74].mxu0 }
 0x359   : > { %v1932_v9 = vmin.f32 %v1919_v3, 2.0  ;;  %v2364_v11 = vadd.f32 %v2363_v8, %v2362_v4  ;;  %v2365_v14 = vpop.f32.mrb[74].mxu1  ;;  %v2626_v0 = vpop.eup %2625  ;;  %v1920_v15 = vmax.f32 %v3423_v6, -20.0 }
 0x35a   : > { %v2308_v38 = vpop.f32.mrb[75].mxu0  ;;  %v2366_v39 = vpop.f32.mrb[75].mxu1  ;;  %v1968_v12 = vsel %vm3393_vm3, %v2626_v0, %v3388_v16 }
 0x35b   : > { %v1951_v17 = vmul.f32 1.442695, %v1932_v9  ;;  %v1873_v18 = vadd.f32 %v2364_v11, %v2306_v10  ;;  %v2309_v40 = vadd.f32 %v2308_v38, %v2307_v13  ;;  %1981 = vst [vmem:[%s3407_s26 + $0x18] sm:$0xff] %v1968_v12  ;;  %v1933_v41 = vmin.f32 %v1920_v15, 2.0 }
 0x35c   : > { %v2367_v19 = vadd.f32 %v2366_v39, %v2365_v14 }
 0x35d   : > { %2631 = vpow2.f32 %v1951_v17  ;;  %v3432_v20 = vadd.f32 %v3372_v47, %v1873_v18  ;;  %v1953_v31 = vmul.f32 1.442695, %v1933_v41 }
 0x35e   : > { %v1876_v21 = vadd.f32 %v2367_v19, %v2309_v40  ;;  %v2628_v22 = vpop.eup %2627  ;;  %v2310_v28 = vpop.f32.mrb[76].mxu0 }
 0x35f   : > { %v1921_v27 = vmax.f32 %v3432_v20, -20.0  ;;  %v2368_v29 = vpop.f32.mrb[76].mxu1  ;;  %v1969_v16 = vsel %vm3393_vm3, %v2628_v22, %v3398_v34  ;;  %2633 = vpow2.f32 %v1953_v31  ;;  %v2311_v32 = vpop.f32.mrb[77].mxu0 }
 0x360   : > { %v1904_v30 = vadd.f32 %v3372_v47, %v1876_v21  ;;  %v2369_v24 = vpop.f32.mrb[77].mxu1  ;;  %v2630_v35 = vpop.eup %2629  ;;  %1982 = vst [vmem:[%s3407_s26 + $0x20] sm:$0xff] %v1969_v16  ;;  %v2312_v37 = vadd.f32 %v2311_v32, %v2310_v28 }
 0x361   : > { %v1934_v25 = vmin.f32 %v1921_v27, 2.0  ;;  %v2370_v33 = vadd.f32 %v2369_v24, %v2368_v29  ;;  %v2313_v42 = vpop.f32.mrb[78].mxu0  ;;  %v2371_v43 = vpop.f32.mrb[78].mxu1  ;;  %v1970_v44 = vsel %vm3393_vm3, %v2630_v35, %v3402_v26 }
 0x362   : > { %v1922_v36 = vmax.f32 %v1904_v30, -20.0  ;;  %v2314_v45 = vpop.f32.mrb[79].mxu0  ;;  %v2372_v34 = vpop.f32.mrb[79].mxu1  ;;  %1983 = vst [vmem:[%s3407_s26 + $0x28] sm:$0xff] %v1970_v44 }
 0x363   : > { %v1955_v46 = vmul.f32 1.442695, %v1934_v25  ;;  %v1881_v48 = vadd.f32 %v2370_v33, %v2312_v37  ;;  %v2315_v49 = vadd.f32 %v2314_v45, %v2313_v42  ;;  %v2373_v50 = vadd.f32 %v2372_v34, %v2371_v43 }
 0x364   : > { %v1935_v51 = vmin.f32 %v1922_v36, 2.0 }
 0x365   : > { %2635 = vpow2.f32 %v1955_v46  ;;  %v1905_v52 = vadd.f32 %v3372_v47, %v1881_v48  ;;  %v1884_v53 = vadd.f32 %v2373_v50, %v2315_v49 }
 0x366   : > { %v1957_v54 = vmul.f32 1.442695, %v1935_v51  ;;  %v2316_v26 = vpop.f32.mrb[80].mxu0  ;;  %v2374_v59 = vpop.f32.mrb[80].mxu1 }
 0x367   : > { %v2632_v55 = vpop.eup %2631  ;;  %v1923_v57 = vmax.f32 %v1905_v52, -20.0  ;;  %v1906_v58 = vadd.f32 %v3372_v47, %v1884_v53  ;;  %v2317_v61 = vpop.f32.mrb[81].mxu0 }
 0x368   : > { %v1971_v60 = vsel %vm3393_vm3, %v2632_v55, %v3416_v63  ;;  %2637 = vpow2.f32 %v1957_v54  ;;  %v2375_v62 = vpop.f32.mrb[81].mxu1  ;;  %v2318_v3 = vadd.f32 %v2317_v61, %v2316_v26  ;;  %v2319_v4 = vpop.f32.mrb[82].mxu0 }
 0x369   : > { %1984 = vst [vmem:[%s3407_s26 + $0x30] sm:$0xff] %v1971_v60  ;;  %v1936_v1 = vmin.f32 %v1923_v57, 2.0  ;;  %v1924_v2 = vmax.f32 %v1906_v58, -20.0  ;;  %v2376_v56 = vadd.f32 %v2375_v62, %v2374_v59  ;;  %v2377_v5 = vpop.f32.mrb[82].mxu1  ;;  %v2634_v7 = vpop.eup %2633 }
 0x36a   : > { %v2320_v8 = vpop.f32.mrb[83].mxu0  ;;  %v2378_v9 = vpop.f32.mrb[83].mxu1  ;;  %v1972_v10 = vsel %vm3393_vm3, %v2634_v7, %v3423_v6 }
 0x36b   : > { %v1959_v63 = vmul.f32 1.442695, %v1936_v1  ;;  %v1937_v11 = vmin.f32 %v1924_v2, 2.0  ;;  %v1889_v13 = vadd.f32 %v2376_v56, %v2318_v3  ;;  %1985 = vst [vmem:[%s3407_s26 + $0x38] sm:$0xff] %v1972_v10 }
 0x36d   : > { %2639 = vpow2.f32 %v1959_v63  ;;  %v1961_v14 = vmul.f32 1.442695, %v1937_v11  ;;  %v1907_v0 = vadd.f32 %v3372_v47, %v1889_v13 }
 0x36f   : > { %v2636_v15 = vpop.eup %2635  ;;  %2641 = vpow2.f32 %v1961_v14  ;;  %v1925_v38 = vmax.f32 %v1907_v0, -20.0 }
 0x370   : > { %v1973_v39 = vsel %vm3393_vm3, %v2636_v15, %v3432_v20 }
 0x371   : > { %1986 = vst [vmem:[%s3407_s26 + $0x40] sm:$0xff] %v1973_v39  ;;  %v1938_v6 = vmin.f32 %v1925_v38, 2.0 }
 0x372   : > { %v2638_v12 = vpop.eup %2637 }
 0x373   : > { %v1974_v17 = vsel %vm3393_vm3, %v2638_v12, %v1904_v30  ;;  %v1963_v18 = vmul.f32 1.442695, %v1938_v6 }
 0x374   : > { %1987 = vst [vmem:[%s3407_s26 + $0x48] sm:$0xff] %v1974_v17 }
 0x375   : > { %2643 = vpow2.f32 %v1963_v18 }
 0x377   : > { %v2640_v47 = vpop.eup %2639 }
 0x378   : > { %v1975_v40 = vsel %vm3393_vm3, %v2640_v47, %v1905_v52 }
 0x379   : > { %v2642_v41 = vpop.eup %2641  ;;  %1988 = vst [vmem:[%s3407_s26 + $0x50] sm:$0xff] %v1975_v40 }
 0x37a   : > { %v1976_v19 = vsel %vm3393_vm3, %v2642_v41, %v1906_v58 }
 0x37b   : > { %1989 = vst [vmem:[%s3407_s26 + $0x58] sm:$0xff] %v1976_v19  ;;  %1998 = sbr.rel (!%p3572_p2) target bundleno = 926 (0x39e), region = 72 }
 0x37f   : > { %v2644_v20 = vpop.eup %2643 }
 0x380   : > { %v1977_v31 = vsel %vm3393_vm3, %v2644_v20, %v1907_v0 }
 0x381   : > { %1990 = vst [vmem:[%s3407_s26 + $0x60] sm:$0xff] %v1977_v31 }
 0x382   : > { %s3581_s21 = smov (!%p2001_p3, %s2000_s21), 13 }
 0x383   : > { %s3478_s23 = sshll.u32 %s3581_s21, 7 }
 0x384   : > { %s2005_s18 = ssub.s32 1664, %s3478_s23 }
 0x385   : > { %2006 = vsyncadd %s3473_s29, %s2005_s18  ;;  %p2257_p4 = scmp.ne.s32.totalorder %s3478_s23, 0  ;;  %s2263_s3 = smul.u32 1664, %s2937_s28 }
 0x386   : > { %s2011_s17 = sshll.u32 %s3407_s26, 4  ;;  %s2873_s10 = smov [#allocation11]   ;;  %s3490_s17 = int_to_ptr.vmem [resolvable:$true] %s2011_s17 }
 0x387   : > { %s3488_s30 = scalar_lea.hbm %s3541_s7, %s2263_s3  ;;  %s2785_s13 = scalar_lea.vmem %s3490_s17, %s3478_s23 }
 0x388   : > { %p2786_p7 = scmp.ne.s32.totalorder %s3490_s17, %s2785_s13  ;;  %s2789_s12 = sshll.u32 %s2873_s10, 4  ;;  %s2790_s12 = int_to_ptr.vmem [resolvable:$false] %s2789_s12 }
 0x389   : > { %s2791_s28 = scalar_lea.vmem %s2790_s12, 3328  ;;  %p2792_p5 = scmp.lt.s32.totalorder %s3490_s17, %s2790_s12 }
 0x38a   : > { %p2787_p8 = pnand %p2786_p7, %p2257_p4  ;;  %p2793_p6 = scmp.lt.s32.totalorder %s2791_s28, %s2785_s13 }
 0x38c   : > { %p2788_p11 = pneg %p2787_p8  ;;  %p2794_p0 = por %p2793_p6, %p2792_p5 }
 0x38e   : > { %p2795_p9 = pnand %p2794_p0, %p2788_p11 }
 0x390   : > { %2798 = shalt.err (!%p2795_p9)
}
 0x391   : > { %s2799_s20 = scalar_lea.hbm %s3488_s30, %s3478_s23  ;;  %s2803_s9 = scalar_lea.hbm %s3541_s7, 3200 }
 0x392   : > { %p2800_p10 = scmp.ne.s32.totalorder %s3488_s30, %s2799_s20  ;;  %p2804_p1 = scmp.lt.u32.totalorder %s3488_s30, %s3541_s7 }
 0x393   : > { %p2805_p2 = scmp.lt.u32.totalorder %s2803_s9, %s2799_s20  ;;  %p2807_p7 = scmp.lt.u32.totalorder %s2799_s20, %s3488_s30 }
 0x394   : > { %p2801_p13 = pnand %p2800_p10, %p2257_p4 }
 0x395   : > { %p2806_p3 = por %p2805_p2, %p2804_p1 }
 0x396   : > { %p2802_p12 = pneg %p2801_p13 }
 0x397   : > { %p2808_p8 = por %p2807_p7, %p2806_p3 }
 0x399   : > { %p2809_p11 = pnand %p2808_p8, %p2802_p12 }
 0x39b   : > { %2812 = shalt.err (!%p2809_p11)
}
 0x39c   : > { %s2874_s16 = smov 128   ;;  %s2875_s26 = smov 8  }
 0x39d   : > { %2017 = dma.vmem_to_hbm [thread:$0]  (%p2257_p4), %s3490_s17, %s3478_s23, %s3488_s30, %s3473_s29, %s2874_s16, %s2874_s16, %s2875_s26  }
 0x39e PF: > { %s3573_s21 = sld [smem:[#allocation19_spill]]  ;;  %p2432_p5 = scmp.ge.s32.totalorder %s2859_s27, 2 }
 0x39f   : > { %s2026_s18 = sand.u32 1, %s2847_s24  }
 0x3a0   : > { %s2027_s3 = scalar_lea.sflag [#allocation4], %s2026_s18 }
 0x3a4   : > { %p3574_p6 = scmp.ne.s32.totalorder %s3573_s21, 0 }
 0x3a6   : > { %p2419_p0 = pnand %p2432_p5, %p3574_p6 }
 0x3a8   : > { %2842 = dma.done.wait (!%p2419_p0), %s2027_s3, 1664  }
 0x3a9   : > { %2844 = vsyncadd (!%p2419_p0), %s2027_s3, 4294965632  ;;  %s3575_s27 = sld [smem:[#allocation17_spill]]  ;;  %s3576_s11 = sld [smem:[#allocation16_spill]] }
 0x3aa   : > { %s3577_s26 = sld [smem:[#allocation18_spill]]  ;;  %s3578_s24 = smov %s2851_s25 }
 0x3af   : > { %p20_p9 = scmp.ge.s32.totalorder %s3575_s27, 4   ;;  %s3579_s25 = smov %s3576_s11 }
 0x3b1   :  { %22 = sbr.rel (!%p20_p9) target bundleno = 8 (0x8), region = 106 }
 0x3b8   :  { %2032 = vsyncpa [#allocation3], 1 }
 0x3b9   :  { %2034 = vsyncpa [#allocation3 + $0x1], 1 }
 0x3ba   :  { %2035 = vsyncpa [#allocation6], 1 }
 0x3bb   :  { %2036 = vsyncpa [#allocation9], 1 }
 0x3bc   :  { %2037 = vsyncpa [#allocation4], 1 }
 0x3bd   :  { %2039 = vsyncpa [#allocation4 + $0x1], 1 }

</bundles_post_ra>
